<compile_context>
chip_gen: v7x
topology: tpu7x:2x2x1
jax: 0.10.0
libtpu: 0.0.40
codegen_flags: <defaults>
</compile_context>

<pallas_src>
import functools

import jax
import jax.numpy as jnp
from jax import lax
from jax.experimental import pallas as pl
from jax.experimental.pallas import tpu as pltpu


# ------------------------------ Pallas kernel ------------------------------- #

def _stgcn_kernel(x_ref, abig_ref, w1_ref, shift1_ref, w2_ref, shift2_ref,
                  o_ref, *, K, KT, C_out, T, V):
    """Fused ST-GCNN layer for one batch element (all operands lane-dense).

    x_ref      : (1, C_in, T*V)     bf16 input (also the identity residual)
    abig_ref   : (T*V, K*T*V)       bf16 [I_T (x) adj[0] | ... | I_T (x) adj[K-1]]
    w1_ref     : (C_out, K*C_in)    bf16 1x1 conv weight (BN1 scale folded), k-major cols
    shift1_ref : (C_out, T*V)       f32  s1*(b1 routed through adj) + t1, tiled over T
    w2_ref     : (C_out, KT*C_out)  bf16 temporal conv weight (BN2 scale folded), dt-major cols
    shift2_ref : (C_out, T*V)       f32  s2*b2 + t2, lane-dense
    o_ref      : (1, C_out, T*V)    f32
    """
    TV = T * V
    PAD = (KT - 1) // 2
    x2d = x_ref[0]                                                # (C_in, TV) bf16

    # ---- graph conv, fused over K: two wide MXU matmuls ----------------------
    # xa[:, k*TV:(k+1)*TV] = x @ (I_T (x) adj[k])
    xa = jnp.dot(x2d, abig_ref[...],
                 preferred_element_type=jnp.float32)              # (C_in, K*TV) f32
    # Restack the K lane-tile-aligned slices along sublanes -> (K*C_in, TV) so a
    # single (C_out, K*C_in) x (K*C_in, TV) matmul does the sum over k and C_in.
    xa_stacked = jnp.concatenate(
        [xa[:, k * TV:(k + 1) * TV] for k in range(K)], axis=0
    ).astype(jnp.bfloat16)                                        # (K*C_in, TV) bf16
    g = jnp.dot(w1_ref[...], xa_stacked,
                preferred_element_type=jnp.float32)               # (C_out, TV) f32

    # BN1 (scale folded into w1) + conv1-bias-through-adjacency shift + ReLU.
    a = jnp.maximum(g + shift1_ref[...], 0.0)                     # (C_out, TV) f32

    # ---- temporal (KT,1) "same" conv, stride 1, fused over taps --------------
    # Edge-validity masks, one per nonzero tap offset (hoisted out of the tap loop).
    lane = lax.broadcasted_iota(jnp.int32, (C_out, TV), 1)
    masks = {}
    for dt in range(KT):
        delta = dt - PAD
        if delta > 0:
            masks[delta] = lane < (T - delta) * V
        elif delta < 0:
            masks[delta] = lane >= (-delta) * V

    # slab_dt[c, t*V+v] = a[c, (t+delta)*V+v], zero outside [0, T): XLU roll + mask.
    slabs = []
    for dt in range(KT):
        delta = dt - PAD
        if delta == 0:
            slabs.append(a)
        else:
            rolled = pltpu.roll(a, shift=(-delta * V) % TV, axis=1)
            slabs.append(jnp.where(masks[delta], rolled, 0.0))
    src = jnp.concatenate(slabs, axis=0).astype(jnp.bfloat16)     # (KT*C_out, TV) bf16
    y = jnp.dot(w2_ref[...], src,
                preferred_element_type=jnp.float32)               # (C_out, TV) f32

    # conv2 bias + BN2 shift (folded into shift2) + identity residual + ReLU.
    y = jnp.maximum(y + shift2_ref[...] + x2d.astype(jnp.float32), 0.0)
    o_ref[0] = y


# ------------------------------ JAX wrapper --------------------------------- #

def st_gcnn_forward(x, adj, params):
    """Forward of ST_GCNN_layer (eval mode).  x: (N, C_in, T, V), adj: (K, V, V)."""
    N, C_in, T, V = x.shape
    K = adj.shape[0]
    C_out = params["s1"].shape[0]
    KT = params["w2"].shape[0]
    TV = T * V
    assert C_in == C_out, "identity residual path requires C_in == C_out"

    s1, t1 = params["s1"][:, 0], params["t1"][:, 0]
    s2, t2 = params["s2"][:, 0], params["t2"][:, 0]
    b1, b2 = params["b1"][:, 0], params["b2"][:, 0]

    # BN1 scale folded into the 1x1 conv weight; K graph kernels fused along columns.
    w1_eff = params["w1"].reshape(K, C_out, C_in) * s1[None, :, None]
    w1_cat = jnp.transpose(w1_eff, (1, 0, 2)).reshape(C_out, K * C_in)
    w1_cat = w1_cat.astype(jnp.bfloat16)

    # Block-diagonal adjacency Abig[k] = I_T (x) adj[k], fused along lanes, bf16.
    # TODO(synk): for production ST-GCN shapes (e.g. T=300, V=25) Abig is O((T*V)^2)
    # and wastes (T-1)/T of the MACs on zeros; switch to a T-tiled (with (KT-1)/2
    # halo) per-k V-contraction and re-derive VMEM per chip gen (v7x: 64 MiB).
    eye_t = jnp.eye(T, dtype=jnp.float32)
    abig = jnp.einsum("ts,kvw->ktvsw", eye_t, adj).reshape(K, TV, TV)
    abig_cat = jnp.transpose(abig, (1, 0, 2)).reshape(TV, K * TV)
    abig_cat = abig_cat.astype(jnp.bfloat16)

    # Conv1 bias routed through the adjacency + BN1 affine shift, lane-dense f32.
    b1k = b1.reshape(K, C_out)                           # (K, C_out)
    adj_colsum = jnp.sum(adj, axis=1)                    # (K, V): sum_v adj[k,v,w]
    badj = jnp.einsum("kc,kw->cw", b1k, adj_colsum)      # (C_out, V)
    shift1 = jnp.tile(s1[:, None] * badj + t1[:, None], (1, T)).astype(jnp.float32)

    # BN2 scale folded into the temporal conv weight; KT taps fused along columns.
    w2_eff = params["w2"] * s2[None, :, None]            # (KT, C_out, C_out)
    w2_cat = jnp.transpose(w2_eff, (1, 0, 2)).reshape(C_out, KT * C_out)
    w2_cat = w2_cat.astype(jnp.bfloat16)
    # Lane-dense shift2 (avoids a last-dim-1 block / masked loads).
    shift2 = jnp.tile((s2 * b2 + t2)[:, None], (1, TV)).astype(jnp.float32)

    # bf16 MXU operands; accumulation stays f32 inside the kernel.
    x_flat = x.reshape(N, C_in, TV).astype(jnp.bfloat16)

    kernel = functools.partial(_stgcn_kernel, K=K, KT=KT, C_out=C_out, T=T, V=V)

    def build_call(single_buffer_constants):
        # Grid-invariant operands: single-buffer them (no redundant DMA, half VMEM).
        if single_buffer_constants:
            def const_spec(shape):
                return pl.BlockSpec(shape, lambda n: (0, 0),
                                    pipeline_mode=pl.Buffered(1))
        else:
            def const_spec(shape):
                return pl.BlockSpec(shape, lambda n: (0, 0))
        return pl.pallas_call(
            kernel,
            out_shape=jax.ShapeDtypeStruct((N, C_out, TV), jnp.float32),
            grid=(N,),
            in_specs=[
                pl.BlockSpec((1, C_in, TV), lambda n: (n, 0, 0)),
                const_spec((TV, K * TV)),
                const_spec((C_out, K * C_in)),
                const_spec((C_out, TV)),
                const_spec((C_out, KT * C_out)),
                const_spec((C_out, TV)),
            ],
            out_specs=pl.BlockSpec((1, C_out, TV), lambda n: (n, 0, 0)),
            compiler_params=pltpu.CompilerParams(
                # grid=(N,) "parallel": one batch element per TensorCore on v7x.
                # TODO(synk): on single-TC chips (v5e/v6e) the grid is a serial
                # 2-step loop; collapsing the batch into one grid step would save
                # ~0.35us of pipeline overhead at these tiny shapes.
                dimension_semantics=("parallel",),
                vmem_limit_bytes=32 * 1024 * 1024,
            ),
        )

    args = (x_flat, abig_cat, w1_cat, shift1, w2_cat, shift2)
    try:
        y_flat = build_call(True)(*args)
    except Exception:
        # TODO(synk): fallback for jax builds where Buffered(1) single-buffering of
        # grid-invariant pallas_call operands is not supported by the TPU pipeline.
        y_flat = build_call(False)(*args)

    y = y_flat.reshape(N, C_out, T, V)
    return y, adj


# ------------------------- deterministic parameters ------------------------- #

def init_params(key, C_in, C_out, K, KT, eps=1e-5):
    ks = jax.random.split(key, 12)
    # ConvTemporalGraphical: Conv2d(C_in, K*C_out, (1,1)) -> weight (K*C_out, C_in)
    w1 = jax.random.normal(ks[0], (K * C_out, C_in), jnp.float32) * 0.1
    b1 = jax.random.normal(ks[1], (K * C_out,), jnp.float32) * 0.1
    # BatchNorm2d #1 (eval mode, folded to scale/shift)
    g1 = jax.random.uniform(ks[2], (C_out,), minval=0.5, maxval=1.5)
    be1 = jax.random.normal(ks[3], (C_out,)) * 0.1
    m1 = jax.random.normal(ks[4], (C_out,)) * 0.1
    v1 = jax.random.uniform(ks[5], (C_out,), minval=0.5, maxval=1.5)
    s1 = g1 / jnp.sqrt(v1 + eps)
    t1 = be1 - m1 * s1
    # Temporal Conv2d(C_out, C_out, (KT,1)): PyTorch weight (C_out, C_out, KT, 1)
    w2_pt = jax.random.normal(ks[6], (C_out, C_out, KT, 1), jnp.float32) * 0.1
    w2 = jnp.transpose(w2_pt[..., 0], (2, 0, 1))                  # (KT, C_out, C_out)
    b2 = jax.random.normal(ks[7], (C_out,), jnp.float32) * 0.1
    # BatchNorm2d #2 (out_bn)
    g2 = jax.random.uniform(ks[8], (C_out,), minval=0.5, maxval=1.5)
    be2 = jax.random.normal(ks[9], (C_out,)) * 0.1
    m2 = jax.random.normal(ks[10], (C_out,)) * 0.1
    v2 = jax.random.uniform(ks[11], (C_out,), minval=0.5, maxval=1.5)
    s2 = g2 / jnp.sqrt(v2 + eps)
    t2 = be2 - m2 * s2
    return {
        "w1": w1, "b1": b1[:, None],
        "s1": s1[:, None].astype(jnp.float32), "t1": t1[:, None].astype(jnp.float32),
        "w2": w2, "b2": b2[:, None],
        "s2": s2[:, None].astype(jnp.float32), "t2": t2[:, None].astype(jnp.float32),
    }


# ------------------------------ pure-JAX ref --------------------------------- #

def reference_forward(x, adj, p):
    N, C_in, T, V = x.shape
    K = adj.shape[0]
    C_out = p["s1"].shape[0]
    KT = p["w2"].shape[0]
    PAD = (KT - 1) // 2
    b1 = p["b1"][:, 0]
    z = jnp.einsum("oc,nctv->notv", p["w1"], x, precision="highest")
    z = z + b1[None, :, None, None]
    z = z.reshape(N, K, C_out, T, V)
    g = jnp.einsum("nkctv,kvw->nctw", z, adj, precision="highest")
    s1, t1 = p["s1"][:, 0], p["t1"][:, 0]
    a = jnp.maximum(g * s1[None, :, None, None] + t1[None, :, None, None], 0.0)
    apad = jnp.pad(a, ((0, 0), (0, 0), (PAD, PAD), (0, 0)))
    y = jnp.zeros((N, C_out, T, V), jnp.float32)
    for dt in range(KT):
        y = y + jnp.einsum("oc,nctv->notv", p["w2"][dt],
                           apad[:, :, dt:dt + T, :], precision="highest")
    b2, s2, t2 = p["b2"][:, 0], p["s2"][:, 0], p["t2"][:, 0]
    y = (y + b2[None, :, None, None]) * s2[None, :, None, None] + t2[None, :, None, None]
    y = jnp.maximum(y + x, 0.0)
    return y, adj


# ----------------------------------- main ------------------------------------ #

if __name__ == "__main__":
    N, C, T, V = 2, 32, 16, 16          # batch, channels, time, joints
    KT, K = 3, 3                        # kernel_size = (temporal, graph)

    key = jax.random.PRNGKey(0)
    kx, kadj, kp = jax.random.split(key, 3)
    x = jax.random.normal(kx, (N, C, T, V), jnp.float32)
    adj = jax.random.normal(kadj, (K, V, V), jnp.float32) * 0.2
    params = init_params(kp, C, C, K, KT)

    y, adj_out = st_gcnn_forward(x, adj, params)
    y = jax.block_until_ready(y)

    y_ref, _ = reference_forward(x, adj, params)
    max_err = float(jnp.max(jnp.abs(y - y_ref)))
    # bf16 MXU operands (per perf review): tolerance loosened from 1e-2 to 2e-2;
    # f32 accumulation keeps the observed max error well below this bound.
    assert jnp.allclose(y, y_ref, atol=2e-2, rtol=2e-2), f"max_err={max_err}"
    print("KERNEL_OK")
</pallas_src>

<mosaic_0001>
module attributes {stable_mosaic.version = 11 : i64} {
  func.func @_stgcn_kernel(%arg0: i32, %arg1: memref<1x32x256xbf16, #tpu.memory_space<vmem>>, %arg2: memref<256x768xbf16, #tpu.memory_space<vmem>>, %arg3: memref<32x96xbf16, #tpu.memory_space<vmem>>, %arg4: memref<32x256xf32, #tpu.memory_space<vmem>>, %arg5: memref<32x96xbf16, #tpu.memory_space<vmem>>, %arg6: memref<32x256xf32, #tpu.memory_space<vmem>>, %arg7: memref<1x32x256xf32, #tpu.memory_space<vmem>>) attributes {dimension_semantics = [#tpu.dimension_semantics<parallel>], iteration_bounds = array<i64: 2>, scalar_prefetch = 0 : i64, scratch_operands = 0 : i64, tpu.core_type = #tpu.core_type<tc>, window_params = [{transform_indices = @transform_0, window_bounds = array<i64: 1, 32, 256>}, {pipeline_mode = #tpu.pipeline_mode<synchronous>, transform_indices = @transform_1, window_bounds = array<i64: 256, 768>}, {pipeline_mode = #tpu.pipeline_mode<synchronous>, transform_indices = @transform_2, window_bounds = array<i64: 32, 96>}, {pipeline_mode = #tpu.pipeline_mode<synchronous>, transform_indices = @transform_3, window_bounds = array<i64: 32, 256>}, {pipeline_mode = #tpu.pipeline_mode<synchronous>, transform_indices = @transform_4, window_bounds = array<i64: 32, 96>}, {pipeline_mode = #tpu.pipeline_mode<synchronous>, transform_indices = @transform_5, window_bounds = array<i64: 32, 256>}, {transform_indices = @transform_6, window_bounds = array<i64: 1, 32, 256>}]} {
    %c0 = arith.constant 0 : index
    %c0_0 = arith.constant 0 : index
    %c0_1 = arith.constant 0 : index
    %0 = vector.load %arg1[%c0, %c0_0, %c0_1] : memref<1x32x256xbf16, #tpu.memory_space<vmem>>, vector<1x32x256xbf16>
    %1 = vector.shape_cast %0 : vector<1x32x256xbf16> to vector<32x256xbf16>
    %c0_2 = arith.constant 0 : index
    %c0_3 = arith.constant 0 : index
    %2 = vector.load %arg2[%c0_2, %c0_3] : memref<256x768xbf16, #tpu.memory_space<vmem>>, vector<256x768xbf16>
    %cst = arith.constant dense<0.000000e+00> : vector<32x768xf32>
    %3 = tpu.matmul %1, %2, %cst {dimension_numbers = #tpu.dot_dimension_numbers<[1], [0], [0], [1], [0, 0, 1, 1], [], []>} : vector<32x256xbf16>, vector<256x768xbf16>, vector<32x768xf32> -> vector<32x768xf32>
    %4 = vector.extract_strided_slice %3 {offsets = [0, 0], sizes = [32, 256], strides = [1, 1]} : vector<32x768xf32> to vector<32x256xf32>
    %5 = vector.extract_strided_slice %3 {offsets = [0, 256], sizes = [32, 256], strides = [1, 1]} : vector<32x768xf32> to vector<32x256xf32>
    %6 = vector.extract_strided_slice %3 {offsets = [0, 512], sizes = [32, 256], strides = [1, 1]} : vector<32x768xf32> to vector<32x256xf32>
    %7 = tpu.concatenate %4, %5, %6 in 0 : vector<32x256xf32>, vector<32x256xf32>, vector<32x256xf32> -> vector<96x256xf32>
    %8 = arith.truncf %7 : vector<96x256xf32> to vector<96x256xbf16>
    %c0_4 = arith.constant 0 : index
    %c0_5 = arith.constant 0 : index
    %9 = vector.load %arg3[%c0_4, %c0_5] : memref<32x96xbf16, #tpu.memory_space<vmem>>, vector<32x96xbf16>
    %cst_6 = arith.constant dense<0.000000e+00> : vector<32x256xf32>
    %10 = tpu.matmul %9, %8, %cst_6 {dimension_numbers = #tpu.dot_dimension_numbers<[1], [0], [0], [1], [0, 0, 1, 1], [], []>} : vector<32x96xbf16>, vector<96x256xbf16>, vector<32x256xf32> -> vector<32x256xf32>
    %c0_7 = arith.constant 0 : index
    %c0_8 = arith.constant 0 : index
    %11 = vector.load %arg4[%c0_7, %c0_8] : memref<32x256xf32, #tpu.memory_space<vmem>>, vector<32x256xf32>
    %12 = arith.addf %10, %11 : vector<32x256xf32>
    %cst_9 = arith.constant 0.000000e+00 : f32
    %13 = vector.broadcast %cst_9 : f32 to vector<32x256xf32>
    %14 = arith.maximumf %12, %13 : vector<32x256xf32>
    %15 = tpu.iota {dimensions = array<i32: 1>} : vector<32x256xi32>
    %c16_i32 = arith.constant 16 : i32
    %16 = vector.broadcast %c16_i32 : i32 to vector<32x256xi32>
    %17 = arith.cmpi sge, %15, %16 : vector<32x256xi32>
    %c240_i32 = arith.constant 240 : i32
    %18 = vector.broadcast %c240_i32 : i32 to vector<32x256xi32>
    %19 = arith.cmpi slt, %15, %18 : vector<32x256xi32>
    %c16_i32_10 = arith.constant 16 : i32
    %20 = tpu.dynamic_rotate %14 by %c16_i32_10 dim 1 : vector<32x256xf32>, i32 -> vector<32x256xf32>
    %cst_11 = arith.constant 0.000000e+00 : f32
    %21 = vector.broadcast %cst_11 : f32 to vector<32x256xf32>
    %22 = arith.select %17, %20, %21 : vector<32x256xi1>, vector<32x256xf32>
    %c240_i32_12 = arith.constant 240 : i32
    %23 = tpu.dynamic_rotate %14 by %c240_i32_12 dim 1 : vector<32x256xf32>, i32 -> vector<32x256xf32>
    %cst_13 = arith.constant 0.000000e+00 : f32
    %24 = vector.broadcast %cst_13 : f32 to vector<32x256xf32>
    %25 = arith.select %19, %23, %24 : vector<32x256xi1>, vector<32x256xf32>
    %26 = tpu.concatenate %22, %14, %25 in 0 : vector<32x256xf32>, vector<32x256xf32>, vector<32x256xf32> -> vector<96x256xf32>
    %27 = arith.truncf %26 : vector<96x256xf32> to vector<96x256xbf16>
    %c0_14 = arith.constant 0 : index
    %c0_15 = arith.constant 0 : index
    %28 = vector.load %arg5[%c0_14, %c0_15] : memref<32x96xbf16, #tpu.memory_space<vmem>>, vector<32x96xbf16>
    %cst_16 = arith.constant dense<0.000000e+00> : vector<32x256xf32>
    %29 = tpu.matmul %28, %27, %cst_16 {dimension_numbers = #tpu.dot_dimension_numbers<[1], [0], [0], [1], [0, 0, 1, 1], [], []>} : vector<32x96xbf16>, vector<96x256xbf16>, vector<32x256xf32> -> vector<32x256xf32>
    %c0_17 = arith.constant 0 : index
    %c0_18 = arith.constant 0 : index
    %30 = vector.load %arg6[%c0_17, %c0_18] : memref<32x256xf32, #tpu.memory_space<vmem>>, vector<32x256xf32>
    %31 = arith.addf %29, %30 : vector<32x256xf32>
    %32 = arith.extf %1 : vector<32x256xbf16> to vector<32x256xf32>
    %33 = arith.addf %31, %32 : vector<32x256xf32>
    %cst_19 = arith.constant 0.000000e+00 : f32
    %34 = vector.broadcast %cst_19 : f32 to vector<32x256xf32>
    %35 = arith.maximumf %33, %34 : vector<32x256xf32>
    %c0_20 = arith.constant 0 : index
    %c0_21 = arith.constant 0 : index
    %c0_22 = arith.constant 0 : index
    %36 = vector.load %arg7[%c0_20, %c0_21, %c0_22] : memref<1x32x256xf32, #tpu.memory_space<vmem>>, vector<1x32x256xf32>
    %37 = vector.shape_cast %36 : vector<1x32x256xf32> to vector<32x256xf32>
    %38 = vector.shape_cast %35 : vector<32x256xf32> to vector<1x32x256xf32>
    tpu.vector_store %arg7[%c0_20, %c0_21, %c0_22], %38 {strides = array<i32>} : memref<1x32x256xf32, #tpu.memory_space<vmem>>, vector<1x32x256xf32>,
    return
  }
  func.func @transform_0(%arg0: i32) -> (i32, i32, i32) {
    %c0_i32 = arith.constant 0 : i32
    %c0_i32_0 = arith.constant 0 : i32
    %c0_i32_1 = arith.constant 0 : i32
    return %arg0, %c0_i32, %c0_i32_0 : i32, i32, i32
  }
  func.func @transform_1(%arg0: i32) -> (i32, i32) {
    %c0_i32 = arith.constant 0 : i32
    %c0_i32_0 = arith.constant 0 : i32
    %c0_i32_1 = arith.constant 0 : i32
    return %c0_i32, %c0_i32_0 : i32, i32
  }
  func.func @transform_2(%arg0: i32) -> (i32, i32) {
    %c0_i32 = arith.constant 0 : i32
    %c0_i32_0 = arith.constant 0 : i32
    %c0_i32_1 = arith.constant 0 : i32
    return %c0_i32, %c0_i32_0 : i32, i32
  }
  func.func @transform_3(%arg0: i32) -> (i32, i32) {
    %c0_i32 = arith.constant 0 : i32
    %c0_i32_0 = arith.constant 0 : i32
    %c0_i32_1 = arith.constant 0 : i32
    return %c0_i32, %c0_i32_0 : i32, i32
  }
  func.func @transform_4(%arg0: i32) -> (i32, i32) {
    %c0_i32 = arith.constant 0 : i32
    %c0_i32_0 = arith.constant 0 : i32
    %c0_i32_1 = arith.constant 0 : i32
    return %c0_i32, %c0_i32_0 : i32, i32
  }
  func.func @transform_5(%arg0: i32) -> (i32, i32) {
    %c0_i32 = arith.constant 0 : i32
    %c0_i32_0 = arith.constant 0 : i32
    %c0_i32_1 = arith.constant 0 : i32
    return %c0_i32, %c0_i32_0 : i32, i32
  }
  func.func @transform_6(%arg0: i32) -> (i32, i32, i32) {
    %c0_i32 = arith.constant 0 : i32
    %c0_i32_0 = arith.constant 0 : i32
    %c0_i32_1 = arith.constant 0 : i32
    return %arg0, %c0_i32, %c0_i32_0 : i32, i32, i32
  }
}

module attributes {stable_mosaic.version = 11 : i64} {
  func.func @_stgcn_kernel(%arg0: i32, %arg1: memref<1x32x256xbf16, #tpu.memory_space<vmem>>, %arg2: memref<256x768xbf16, #tpu.memory_space<vmem>>, %arg3: memref<32x96xbf16, #tpu.memory_space<vmem>>, %arg4: memref<32x256xf32, #tpu.memory_space<vmem>>, %arg5: memref<32x96xbf16, #tpu.memory_space<vmem>>, %arg6: memref<32x256xf32, #tpu.memory_space<vmem>>, %arg7: memref<1x32x256xf32, #tpu.memory_space<vmem>>) attributes {dimension_semantics = [#tpu.dimension_semantics<parallel>], iteration_bounds = array<i64: 2>, scalar_prefetch = 0 : i64, scratch_operands = 0 : i64, tpu.core_type = #tpu.core_type<tc>, window_params = [{transform_indices = @transform_0, window_bounds = array<i64: 1, 32, 256>}, {pipeline_mode = #tpu.pipeline_mode<synchronous>, transform_indices = @transform_1, window_bounds = array<i64: 256, 768>}, {pipeline_mode = #tpu.pipeline_mode<synchronous>, transform_indices = @transform_2, window_bounds = array<i64: 32, 96>}, {pipeline_mode = #tpu.pipeline_mode<synchronous>, transform_indices = @transform_3, window_bounds = array<i64: 32, 256>}, {pipeline_mode = #tpu.pipeline_mode<synchronous>, transform_indices = @transform_4, window_bounds = array<i64: 32, 96>}, {pipeline_mode = #tpu.pipeline_mode<synchronous>, transform_indices = @transform_5, window_bounds = array<i64: 32, 256>}, {transform_indices = @transform_6, window_bounds = array<i64: 1, 32, 256>}]} {
    %c0 = arith.constant 0 : index
    %c0_0 = arith.constant 0 : index
    %c0_1 = arith.constant 0 : index
    %0 = vector.load %arg1[%c0, %c0_0, %c0_1] : memref<1x32x256xbf16, #tpu.memory_space<vmem>>, vector<1x32x256xbf16>
    %1 = vector.shape_cast %0 : vector<1x32x256xbf16> to vector<32x256xbf16>
    %c0_2 = arith.constant 0 : index
    %c0_3 = arith.constant 0 : index
    %2 = vector.load %arg2[%c0_2, %c0_3] : memref<256x768xbf16, #tpu.memory_space<vmem>>, vector<256x768xbf16>
    %cst = arith.constant dense<0.000000e+00> : vector<32x768xf32>
    %3 = tpu.matmul %1, %2, %cst {dimension_numbers = #tpu.dot_dimension_numbers<[1], [0], [0], [1], [0, 0, 1, 1], [], []>} : vector<32x256xbf16>, vector<256x768xbf16>, vector<32x768xf32> -> vector<32x768xf32>
    %4 = vector.extract_strided_slice %3 {offsets = [0, 0], sizes = [32, 256], strides = [1, 1]} : vector<32x768xf32> to vector<32x256xf32>
    %5 = vector.extract_strided_slice %3 {offsets = [0, 256], sizes = [32, 256], strides = [1, 1]} : vector<32x768xf32> to vector<32x256xf32>
    %6 = vector.extract_strided_slice %3 {offsets = [0, 512], sizes = [32, 256], strides = [1, 1]} : vector<32x768xf32> to vector<32x256xf32>
    %7 = tpu.concatenate %4, %5, %6 in 0 : vector<32x256xf32>, vector<32x256xf32>, vector<32x256xf32> -> vector<96x256xf32>
    %8 = arith.truncf %7 : vector<96x256xf32> to vector<96x256xbf16>
    %c0_4 = arith.constant 0 : index
    %c0_5 = arith.constant 0 : index
    %9 = vector.load %arg3[%c0_4, %c0_5] : memref<32x96xbf16, #tpu.memory_space<vmem>>, vector<32x96xbf16>
    %cst_6 = arith.constant dense<0.000000e+00> : vector<32x256xf32>
    %10 = tpu.matmul %9, %8, %cst_6 {dimension_numbers = #tpu.dot_dimension_numbers<[1], [0], [0], [1], [0, 0, 1, 1], [], []>} : vector<32x96xbf16>, vector<96x256xbf16>, vector<32x256xf32> -> vector<32x256xf32>
    %c0_7 = arith.constant 0 : index
    %c0_8 = arith.constant 0 : index
    %11 = vector.load %arg4[%c0_7, %c0_8] : memref<32x256xf32, #tpu.memory_space<vmem>>, vector<32x256xf32>
    %12 = arith.addf %10, %11 : vector<32x256xf32>
    %cst_9 = arith.constant 0.000000e+00 : f32
    %13 = vector.broadcast %cst_9 : f32 to vector<32x256xf32>
    %14 = arith.maximumf %12, %13 : vector<32x256xf32>
    %15 = tpu.iota {dimensions = array<i32: 1>} : vector<32x256xi32>
    %c16_i32 = arith.constant 16 : i32
    %16 = vector.broadcast %c16_i32 : i32 to vector<32x256xi32>
    %17 = arith.cmpi sge, %15, %16 : vector<32x256xi32>
    %c240_i32 = arith.constant 240 : i32
    %18 = vector.broadcast %c240_i32 : i32 to vector<32x256xi32>
    %19 = arith.cmpi slt, %15, %18 : vector<32x256xi32>
    %c16_i32_10 = arith.constant 16 : i32
    %20 = tpu.dynamic_rotate %14 by %c16_i32_10 dim 1 : vector<32x256xf32>, i32 -> vector<32x256xf32>
    %cst_11 = arith.constant 0.000000e+00 : f32
    %21 = vector.broadcast %cst_11 : f32 to vector<32x256xf32>
    %22 = arith.select %17, %20, %21 : vector<32x256xi1>, vector<32x256xf32>
    %c240_i32_12 = arith.constant 240 : i32
    %23 = tpu.dynamic_rotate %14 by %c240_i32_12 dim 1 : vector<32x256xf32>, i32 -> vector<32x256xf32>
    %cst_13 = arith.constant 0.000000e+00 : f32
    %24 = vector.broadcast %cst_13 : f32 to vector<32x256xf32>
    %25 = arith.select %19, %23, %24 : vector<32x256xi1>, vector<32x256xf32>
    %26 = tpu.concatenate %22, %14, %25 in 0 : vector<32x256xf32>, vector<32x256xf32>, vector<32x256xf32> -> vector<96x256xf32>
    %27 = arith.truncf %26 : vector<96x256xf32> to vector<96x256xbf16>
    %c0_14 = arith.constant 0 : index
    %c0_15 = arith.constant 0 : index
    %28 = vector.load %arg5[%c0_14, %c0_15] : memref<32x96xbf16, #tpu.memory_space<vmem>>, vector<32x96xbf16>
    %cst_16 = arith.constant dense<0.000000e+00> : vector<32x256xf32>
    %29 = tpu.matmul %28, %27, %cst_16 {dimension_numbers = #tpu.dot_dimension_numbers<[1], [0], [0], [1], [0, 0, 1, 1], [], []>} : vector<32x96xbf16>, vector<96x256xbf16>, vector<32x256xf32> -> vector<32x256xf32>
    %c0_17 = arith.constant 0 : index
    %c0_18 = arith.constant 0 : index
    %30 = vector.load %arg6[%c0_17, %c0_18] : memref<32x256xf32, #tpu.memory_space<vmem>>, vector<32x256xf32>
    %31 = arith.addf %29, %30 : vector<32x256xf32>
    %32 = arith.extf %1 : vector<32x256xbf16> to vector<32x256xf32>
    %33 = arith.addf %31, %32 : vector<32x256xf32>
    %cst_19 = arith.constant 0.000000e+00 : f32
    %34 = vector.broadcast %cst_19 : f32 to vector<32x256xf32>
    %35 = arith.maximumf %33, %34 : vector<32x256xf32>
    %c0_20 = arith.constant 0 : index
    %c0_21 = arith.constant 0 : index
    %c0_22 = arith.constant 0 : index
    %36 = vector.load %arg7[%c0_20, %c0_21, %c0_22] : memref<1x32x256xf32, #tpu.memory_space<vmem>>, vector<1x32x256xf32>
    %37 = vector.shape_cast %36 : vector<1x32x256xf32> to vector<32x256xf32>
    %38 = vector.shape_cast %35 : vector<32x256xf32> to vector<1x32x256xf32>
    tpu.vector_store %arg7[%c0_20, %c0_21, %c0_22], %38 {strides = array<i32>} : memref<1x32x256xf32, #tpu.memory_space<vmem>>, vector<1x32x256xf32>,
    return
  }
  func.func @transform_0(%arg0: i32) -> (i32, i32, i32) {
    %c0_i32 = arith.constant 0 : i32
    %c0_i32_0 = arith.constant 0 : i32
    %c0_i32_1 = arith.constant 0 : i32
    return %arg0, %c0_i32, %c0_i32_0 : i32, i32, i32
  }
  func.func @transform_1(%arg0: i32) -> (i32, i32) {
    %c0_i32 = arith.constant 0 : i32
    %c0_i32_0 = arith.constant 0 : i32
    %c0_i32_1 = arith.constant 0 : i32
    return %c0_i32, %c0_i32_0 : i32, i32
  }
  func.func @transform_2(%arg0: i32) -> (i32, i32) {
    %c0_i32 = arith.constant 0 : i32
    %c0_i32_0 = arith.constant 0 : i32
    %c0_i32_1 = arith.constant 0 : i32
    return %c0_i32, %c0_i32_0 : i32, i32
  }
  func.func @transform_3(%arg0: i32) -> (i32, i32) {
    %c0_i32 = arith.constant 0 : i32
    %c0_i32_0 = arith.constant 0 : i32
    %c0_i32_1 = arith.constant 0 : i32
    return %c0_i32, %c0_i32_0 : i32, i32
  }
  func.func @transform_4(%arg0: i32) -> (i32, i32) {
    %c0_i32 = arith.constant 0 : i32
    %c0_i32_0 = arith.constant 0 : i32
    %c0_i32_1 = arith.constant 0 : i32
    return %c0_i32, %c0_i32_0 : i32, i32
  }
  func.func @transform_5(%arg0: i32) -> (i32, i32) {
    %c0_i32 = arith.constant 0 : i32
    %c0_i32_0 = arith.constant 0 : i32
    %c0_i32_1 = arith.constant 0 : i32
    return %c0_i32, %c0_i32_0 : i32, i32
  }
  func.func @transform_6(%arg0: i32) -> (i32, i32, i32) {
    %c0_i32 = arith.constant 0 : i32
    %c0_i32_0 = arith.constant 0 : i32
    %c0_i32_1 = arith.constant 0 : i32
    return %arg0, %c0_i32, %c0_i32_0 : i32, i32, i32
  }
}

</mosaic_0001>

<bundles_post_ra>
// kernel: tpu_custom_call.1
= control target key start
LH: loop header
LB: loop body
LE: loop exit
PB: predicated region body
PF: predicated region fallthrough
CT: control target
= control target key end

     0   :  { %11 = vsyncpa [#allocation3], 0  ;;  %s2722_s0 = inlined_call_operand.hbm [shape: bf16[2,32,256], index: 0, kind: input, shape index: {}]   ;;  %s2723_s1 = inlined_call_operand.hbm [shape: bf16[256,768], index: 1, kind: input, shape index: {}]   ;;  %s2724_s2 = inlined_call_operand.hbm [shape: bf16[32,96], index: 2, kind: input, shape index: {}]   ;;  %s2725_s3 = inlined_call_operand.hbm [shape: f32[32,256], index: 3, kind: input, shape index: {}]   ;;  %s2726_s4 = inlined_call_operand.hbm [shape: bf16[32,96], index: 4, kind: input, shape index: {}]   ;;  %s2727_s5 = inlined_call_operand.hbm [shape: f32[32,256], index: 5, kind: input, shape index: {}]   ;;  %s2728_s6 = inlined_call_operand.hbm [shape: f32[2,32,256], index: 6, kind: output, shape index: {}]  }
   0x1   :  { %13 = vsyncpa [#allocation3 + $0x1], 0 }
   0x2   :  { %14 = vsyncpa [#allocation6], 0 }
   0x3   :  { %15 = vsyncpa [#allocation9], 0 }
   0x4   :  { %16 = vsyncpa [#allocation12], 0 }
   0x5   :  { %17 = vsyncpa [#allocation4], 0 }
   0x6   :  { %19 = vsyncpa [#allocation4 + $0x1], 0  ;;  %s2289_s21 = smov 0   ;;  %s2291_s22 = smov 0  }
   0x7   :  { %s2293_s23 = smov 0   ;;  %s2295_s24 = smov 0  }
   0x8 LB: > { %s2235_s25 = smov [#allocation5]   ;;  %s2310_s27 = sadd.s32 4294967295, %s2233_s24   ;;  %s2233_s24 = sphi %s2295_s24, %s2759_s24   ;;  %s2229_s23 = sphi %s2293_s23, %s2758_s23   ;;  %s2225_s22 = sphi %s2291_s22, %s2757_s22   ;;  %s2221_s21 = sphi %s2289_s21, %s2756_s21  }
   0x9   : > { %s199_s26 = sshll.u32 %s2235_s25, 4  ;;  %p1539_p0 = scmp.ge.s32.totalorder %s2233_s24, 1  ;;  %s2315_s26 = int_to_ptr.vmem [resolvable:$true] %s199_s26 }
   0xa   : > { %p2729_p1 = scmp.eq.s32.totalorder %s2310_s27, 0  ;;  %p187_p2 = scmp.lt.s32.totalorder %s2233_s24, 3 }
   0xb   : > { %s2236_s29 = smov [#allocation8]   ;;  %s2237_s8 = smov [#allocation7]  }
   0xc   : > { %p2317_p3 = pnand %p1539_p0, %p187_p2  ;;  %s225_s30 = sshll.u32 %s2236_s29, 4  ;;  %s2330_s30 = int_to_ptr.vmem [resolvable:$true] %s225_s30 }
   0xd   : > { %s2332_s9 = sshll.u32 %s2237_s8, 4  ;;  %s1985_s12 = scalar_lea.hbm %s2723_s1, 12288  ;;  %s213_s9 = int_to_ptr.vmem [resolvable:$true] %s2332_s9 }
   0xe   : > { %s2734_s28 = scalar_select %p2317_p3, 1, 0 }
   0xf   : > { %p1708_p5 = pneg %p2317_p3  ;;  %p1986_p7 = scmp.ne.s32.totalorder %s2723_s1, %s1985_s12 }
  0x10   : > { %p1992_p11 = scmp.lt.u32.totalorder %s1985_s12, %s2723_s1 }
  0x11   : > { %p2326_p6 = pnand %p1708_p5, %p2729_p1 }
  0x13   : > { %p2342_p8 = pneg %p2326_p6 }
  0x15   : > { %p1988_p9 = pnand %p2342_p8, %p1986_p7 }
  0x17   : > { %p1989_p10 = pneg %p1988_p9 }
  0x19   : > { %p1994_p12 = pnand %p1992_p11, %p1989_p10 }
  0x1b   : > { %1997 = shalt.err (!%p1994_p12)
}
  0x1c   : > { %s1998_s18 = scalar_lea.vmem %s2315_s26, 12288  ;;  %p2006_p5 = scmp.lt.s32.totalorder %s2315_s26, %s2315_s26 }
  0x1d   : > { %p1999_p13 = scmp.ne.s32.totalorder %s2315_s26, %s1998_s18  ;;  %p2007_p4 = scmp.lt.s32.totalorder %s1998_s18, %s1998_s18 }
  0x1f   : > { %p2001_p0 = pnand %p1999_p13, %p2342_p8  ;;  %p2008_p7 = por %p2007_p4, %p2006_p5 }
  0x21   : > { %p2002_p2 = pneg %p2001_p0 }
  0x23   : > { %p2009_p9 = pnand %p2008_p7, %p2002_p2 }
  0x25   : > { %2012 = shalt.err (!%p2009_p9)
}
  0x26   : > { %s2238_s19 = smov 384   ;;  %s2239_s20 = smov 24  }
  0x27   : > { %1711 = dma.hbm_to_vmem [thread:$0]  (!%p2326_p6), %s2723_s1, 12288, %s2315_s26, [#allocation6], %s2238_s19, %s2238_s19, %s2239_s20  }
  0x28   : > { %s2013_s11 = scalar_lea.hbm %s2725_s3, 1024 }
  0x29   : > { %p2014_p4 = scmp.ne.s32.totalorder %s2725_s3, %s2013_s11  ;;  %p2020_p12 = scmp.lt.u32.totalorder %s2013_s11, %s2725_s3 }
  0x2b   : > { %p2016_p10 = pnand %p2014_p4, %p2342_p8 }
  0x2d   : > { %p2017_p11 = pneg %p2016_p10 }
  0x2f   : > { %p2022_p13 = pnand %p2020_p12, %p2017_p11 }
  0x31   : > { %2025 = shalt.err (!%p2022_p13)
}
  0x32   : > { %s2026_s26 = scalar_lea.vmem %s2330_s30, 1024  ;;  %p2034_p7 = scmp.lt.s32.totalorder %s2330_s30, %s2330_s30 }
  0x33   : > { %p2027_p0 = scmp.ne.s32.totalorder %s2330_s30, %s2026_s26  ;;  %p2035_p9 = scmp.lt.s32.totalorder %s2026_s26, %s2026_s26 }
  0x35   : > { %p2029_p2 = pnand %p2027_p0, %p2342_p8  ;;  %p2036_p4 = por %p2035_p9, %p2034_p7 }
  0x37   : > { %p2030_p5 = pneg %p2029_p2 }
  0x39   : > { %p2037_p10 = pnand %p2036_p4, %p2030_p5 }
  0x3b   : > { %2040 = shalt.err (!%p2037_p10)
}
  0x3c   : > { %s2731_s17 = smov 256   ;;  %s2732_s18 = smov 16  }
  0x3d   : > { %1717 = dma.hbm_to_vmem [thread:$0]  (!%p2326_p6), %s2725_s3, 1024, %s2330_s30, [#allocation9], %s2731_s17, %s2731_s17, %s2732_s18  }
  0x3e   : > { %s2041_s8 = scalar_lea.hbm %s2724_s2, 256 }
  0x3f   : > { %p2042_p11 = scmp.ne.s32.totalorder %s2724_s2, %s2041_s8  ;;  %p2048_p0 = scmp.lt.u32.totalorder %s2041_s8, %s2724_s2 }
  0x41   : > { %p2044_p12 = pnand %p2042_p11, %p2342_p8 }
  0x43   : > { %p2045_p13 = pneg %p2044_p12 }
  0x45   : > { %p2050_p2 = pnand %p2048_p0, %p2045_p13 }
  0x47   : > { %2053 = shalt.err (!%p2050_p2)
}
  0x48   : > { %s2054_s14 = scalar_lea.vmem %s213_s9, 256  ;;  %p2062_p4 = scmp.lt.s32.totalorder %s213_s9, %s213_s9 }
  0x49   : > { %p2055_p5 = scmp.ne.s32.totalorder %s213_s9, %s2054_s14  ;;  %p2063_p10 = scmp.lt.s32.totalorder %s2054_s14, %s2054_s14 }
  0x4b   : > { %p2057_p7 = pnand %p2055_p5, %p2342_p8  ;;  %p2064_p1 = por %p2063_p10, %p2062_p4 }
  0x4d   : > { %p2058_p9 = pneg %p2057_p7 }
  0x4f   : > { %p2065_p3 = pnand %p2064_p1, %p2058_p9 }
  0x51   : > { %2068 = shalt.err (!%p2065_p3)
}
  0x52   : > { %s2242_s30 = smov 64   ;;  %s2243_s16 = smov 4  }
  0x53   : > { %1714 = dma.hbm_to_vmem [thread:$0]  (!%p2326_p6), %s2724_s2, 256, %s213_s9, [#allocation6], %s2242_s30, %s2242_s30, %s2243_s16  }
  0x54   : > { %s2244_s20 = smov [#allocation10]   ;;  %s2245_s29 = smov [#allocation11]  }
  0x55   : > { %s238_s25 = sshll.u32 %s2244_s20, 4  ;;  %s251_s8 = sshll.u32 %s2245_s29, 4  ;;  %s239_s25 = int_to_ptr.vmem [resolvable:$true] %s238_s25  ;;  %s252_s8 = int_to_ptr.vmem [resolvable:$true] %s251_s8 }
  0x56   : > { %s2069_s12 = scalar_lea.hbm %s2726_s4, 256 }
  0x57   : > { %p2070_p1 = scmp.ne.s32.totalorder %s2726_s4, %s2069_s12  ;;  %p2076_p12 = scmp.lt.u32.totalorder %s2069_s12, %s2726_s4 }
  0x59   : > { %p2072_p3 = pnand %p2070_p1, %p2342_p8 }
  0x5b   : > { %p2073_p11 = pneg %p2072_p3 }
  0x5d   : > { %p2078_p13 = pnand %p2076_p12, %p2073_p11 }
  0x5f   : > { %2081 = shalt.err (!%p2078_p13)
}
  0x60   : > { %s2082_s9 = scalar_lea.vmem %s239_s25, 256  ;;  %p2090_p7 = scmp.lt.s32.totalorder %s239_s25, %s239_s25 }
  0x61   : > { %p2083_p0 = scmp.ne.s32.totalorder %s239_s25, %s2082_s9  ;;  %p2091_p9 = scmp.lt.s32.totalorder %s2082_s9, %s2082_s9 }
  0x63   : > { %p2085_p2 = pnand %p2083_p0, %p2342_p8  ;;  %p2092_p4 = por %p2091_p9, %p2090_p7 }
  0x65   : > { %p2086_p5 = pneg %p2085_p2 }
  0x67   : > { %p2093_p10 = pnand %p2092_p4, %p2086_p5 }
  0x69   : > { %2096 = shalt.err (!%p2093_p10)
}
  0x6a   : > { %1720 = dma.hbm_to_vmem [thread:$0]  (!%p2326_p6), %s2726_s4, 256, %s239_s25, [#allocation9], %s2242_s30, %s2242_s30, %s2243_s16  }
  0x6b   : > { %s2097_s20 = scalar_lea.hbm %s2727_s5, 1024 }
  0x6c   : > { %p2098_p1 = scmp.ne.s32.totalorder %s2727_s5, %s2097_s20  ;;  %p2104_p12 = scmp.lt.u32.totalorder %s2097_s20, %s2727_s5 }
  0x6e   : > { %p2100_p3 = pnand %p2098_p1, %p2342_p8 }
  0x70   : > { %p2101_p11 = pneg %p2100_p3 }
  0x72   : > { %p2106_p13 = pnand %p2104_p12, %p2101_p11 }
  0x74   : > { %2109 = shalt.err (!%p2106_p13)
}
  0x75   : > { %s2110_s13 = scalar_lea.vmem %s252_s8, 1024  ;;  %p2118_p7 = scmp.lt.s32.totalorder %s252_s8, %s252_s8 }
  0x76   : > { %p2111_p0 = scmp.ne.s32.totalorder %s252_s8, %s2110_s13  ;;  %p2119_p9 = scmp.lt.s32.totalorder %s2110_s13, %s2110_s13 }
  0x78   : > { %p2113_p2 = pnand %p2111_p0, %p2342_p8  ;;  %p2120_p4 = por %p2119_p9, %p2118_p7 }
  0x7a   : > { %p2114_p5 = pneg %p2113_p2 }
  0x7c   : > { %p2121_p10 = pnand %p2120_p4, %p2114_p5 }
  0x7e   : > { %2124 = shalt.err (!%p2121_p10)
}
  0x7f   : > { %s2737_s30 = smov 16   ;;  %s2738_s16 = smov 256  }
  0x80   : > { %1723 = dma.hbm_to_vmem [thread:$0]  (!%p2326_p6), %s2727_s5, 1024, %s252_s8, [#allocation12], %s2738_s16, %s2738_s16, %s2737_s30  }
  0x81   : > { %s1538_s7 = sadd.s32 4294967294, %s2233_s24   ;;  %s2449_s15 = sadd.s32 1, %s2233_s24  }
  0x82   : > { %s32_s9 = sadd.s32 1, %s2229_s23  ;;  %s29_s26 = ssub.s32 %s2233_s24, %s2449_s15 }
  0x83   : > { %p39_p8 = scmp.ne.s32.totalorder %s2229_s23, %s2225_s22  ;;  %p30_p1 = scmp.eq.s32.totalorder %s29_s26, 0 }
  0x84   : > { %p40_p3 = scmp.eq.s32.totalorder %s2233_s24, 0  ;;  %p45_p11 = scmp.ne.s32.totalorder %s2225_s22, %s2221_s21 }
  0x85   : > { %p174_p12 = scmp.eq.s32.totalorder %s2310_s27, 1  ;;  %p2739_p0 = scmp.eq.s32.totalorder %s2310_s27, 0 }
  0x86   : > { %s2461_s19 = scalar_select %p30_p1, %s2229_s23, %s32_s9  }
  0x87   : > { %p41_p13 = por %p40_p3, %p39_p8  ;;  %p2465_p2 = por %p2739_p0, %p45_p11 }
  0x88   : > { %p2469_p6 = por %p174_p12, %p39_p8  ;;  %p180_p5 = scmp.eq.s32.totalorder %s1538_s7, 1 }
  0x89   : > { %p1737_p7 = scmp.lt.s32.totalorder %s2233_s24, 2  ;;  %s265_s18 = sand.u32 1, %s2229_s23  }
  0x8a   : > { %s2741_s8 = scalar_select %p2469_p6, 1, 0 }
  0x8b   : > { %p2475_p9 = por %p180_p5, %p45_p11  ;;  %s1546_s29 = sshll.u32 %s265_s18, 5 }
  0x8c   : > { %s1682_s10 = sshll.u32 %s2233_s24, 9  ;;  %s269_s30 = scalar_lea.vmem [#allocation2], %s1546_s29 }
  0x8d   : > { %s2742_s20 = scalar_select %p2475_p9, 1, 0 }
  0x8e   : > { %s2483_s13 = scalar_lea.hbm %s2722_s0, %s1682_s10  ;;  %s276_s16 = sshll.u32 %s269_s30, 4  ;;  %s2489_s16 = int_to_ptr.vmem [resolvable:$true] %s276_s16 }
  0x8f   : > { %p2485_p4 = pnand %p1737_p7, %p41_p13  ;;  %s2491_s14 = scalar_lea.sflag [#allocation3], %s265_s18 }
  0x90   : > { %s2125_s7 = scalar_lea.hbm %s2483_s13, 512  ;;  %s2130_s29 = scalar_lea.hbm %s2722_s0, 1024 }
  0x91   : > { %p2126_p10 = scmp.ne.s32.totalorder %s2483_s13, %s2125_s7  ;;  %p2127_p8 = pneg %p2485_p4 }
  0x92   : > { %p2131_p11 = scmp.lt.u32.totalorder %s2483_s13, %s2722_s0  ;;  %p2132_p12 = scmp.lt.u32.totalorder %s2130_s29, %s2125_s7 }
  0x93   : > { %p2128_p1 = pnand %p2127_p8, %p2126_p10  ;;  %p2134_p0 = scmp.lt.u32.totalorder %s2125_s7, %s2483_s13 }
  0x94   : > { %p2133_p13 = por %p2132_p12, %p2131_p11 }
  0x95   : > { %p2129_p3 = pneg %p2128_p1 }
  0x96   : > { %p2135_p5 = por %p2134_p0, %p2133_p13 }
  0x98   : > { %p2136_p7 = pnand %p2135_p5, %p2129_p3 }
  0x9a   : > { %2139 = shalt.err (!%p2136_p7)
}
  0x9b   : > { %s2140_s18 = scalar_lea.vmem %s2489_s16, 512  ;;  %s2246_s12 = smov [#allocation2]  }
  0x9c   : > { %p2141_p10 = scmp.ne.s32.totalorder %s2489_s16, %s2140_s18  ;;  %s2145_s30 = sshll.u32 %s2246_s12, 4  ;;  %s2146_s30 = int_to_ptr.vmem [resolvable:$false] %s2145_s30 }
  0x9d   : > { %s2147_s9 = scalar_lea.vmem %s2146_s30, 1024  ;;  %p2148_p6 = scmp.lt.s32.totalorder %s2489_s16, %s2146_s30 }
  0x9e   : > { %p2143_p1 = pnand %p2141_p10, %p2127_p8  ;;  %p2149_p11 = scmp.lt.s32.totalorder %s2147_s9, %s2140_s18 }
  0xa0   : > { %p2144_p9 = pneg %p2143_p1  ;;  %p2150_p12 = por %p2149_p11, %p2148_p6 }
  0xa2   : > { %p2151_p13 = pnand %p2150_p12, %p2144_p9 }
  0xa4   : > { %2154 = shalt.err (!%p2151_p13)
}
  0xa5   : > { %s2247_s7 = smov 128   ;;  %s2248_s26 = smov 8  }
  0xa6   : > { %1727 = dma.hbm_to_vmem [thread:$0]  (!%p2485_p4), %s2483_s13, 512, %s2489_s16, %s2491_s14, %s2247_s7, %s2247_s7, %s2248_s26  }
  0xa7   : > { %p2744_p8 = scmp.ne.s32.totalorder %s2734_s28, 0 }
  0xa8   : > { %s2522_s29 = sand.u32 (!%p2744_p8), 1, %s2225_s22  }
  0xa9   : > { %288 = sbr.rel (%p2744_p8) target bundleno = 1161 (0x489), region = 44  ;;  %s1550_s10 = sshll.u32 (!%p2744_p8), %s2522_s29, 5 }
  0xaa   : > { %s291_s11 = scalar_lea.sflag (!%p2744_p8), [#allocation3], %s2522_s29  ;;  %s2526_s18 = scalar_lea.vmem (!%p2744_p8), [#allocation2], %s1550_s10 }
  0xb0   : > { %2200 = dma.done.wait (%p2465_p2), %s291_s11, 512  }
  0xb1   : > { %2202 = vsyncadd (%p2465_p2), %s291_s11, 4294966784  ;;  %p2745_p6 = scmp.eq.s32.totalorder %s2310_s27, 0 }
  0xb3   : > { %2204 = dma.done.wait (%p2745_p6), [#allocation6], 12544   ;;  %p2746_p9 = pmov %p2745_p6 }
  0xb4   : > { %p2747_p4 = pmov %p2745_p6 }
  0xb5   : > { %2206 = vsyncadd (%p2746_p9), [#allocation6], 4294954752 }
  0xb6   : > { %2208 = dma.done.wait (%p2747_p4), [#allocation9], 1280   ;;  %p2748_p3 = pmov %p2747_p4 }
  0xb8   : > { %2210 = vsyncadd (%p2748_p3), [#allocation9], 4294966016  ;;  %p2749_p0 = pmov %p2748_p3 }
  0xba   : > { %2212 = dma.done.wait (%p2749_p0), [#allocation12], 1024   ;;  %p2750_p5 = pmov %p2749_p0 }
  0xbb   : > { %v1833_v0 = vld [vmem:[#allocation5 + $0x4] ss:$24 sps:$4 sm:$0xff]   ;;  %v1835_v1 = vld [vmem:[#allocation5] ss:$24 sps:$4 sm:$0xff]   ;;  %v1836_v2 = vld [vmem:[#allocation5 + $0x34] ss:$24 sps:$4 sm:$0xff]  }
  0xbc   : > { %2214 = vsyncadd (%p2750_p5), [#allocation12], 4294966272  ;;  %944 = vmatprep.subr.bf16.mxu0 %v1833_v0  ;;  %v1838_v3 = vld [vmem:[#allocation5 + $0x30] ss:$24 sps:$4 sm:$0xff]   ;;  %v1839_v4 = vld [vmem:[#allocation5 + $0x64] ss:$24 sps:$4 sm:$0xff]  }
  0xbd   : > { %945 = vmatpush1.bf16.msra.mxu0 %v1835_v1  ;;  %v1841_v5 = vld [vmem:[#allocation5 + $0x60] ss:$24 sps:$4 sm:$0xff]   ;;  %v1842_v6 = vld [vmem:[#allocation5 + $0x94] ss:$24 sps:$4 sm:$0xff]   ;;  %v1844_v7 = vld [vmem:[#allocation5 + $0x90] ss:$24 sps:$4 sm:$0xff]  }
  0xbe   : > { %946 = vmatprep.subr.bf16.mxu0 %v1836_v2  ;;  %v1845_v8 = vld [vmem:[#allocation5 + $0xc4] ss:$24 sps:$4 sm:$0xff]   ;;  %v1847_v9 = vld [vmem:[#allocation5 + $0xc0] ss:$24 sps:$4 sm:$0xff]   ;;  %v1848_v10 = vld [vmem:[#allocation5 + $0xf4] ss:$24 sps:$4 sm:$0xff]  }
  0xbf   : > { %v1850_v11 = vld [vmem:[#allocation5 + $0xf0] ss:$24 sps:$4 sm:$0xff]   ;;  %v1874_v12 = vld [vmem:[#allocation5 + $0xc] ss:$24 sps:$4 sm:$0xff]   ;;  %v1880_v15 = vld [vmem:[#allocation5 + $0x3c] ss:$24 sps:$4 sm:$0xff]  }
  0xc0   : > { %v1877_v13 = vld [vmem:[#allocation5 + $0x8] ss:$24 sps:$4 sm:$0xff]   ;;  %v1851_v14 = vld [vmem:[#allocation5 + $0x124] ss:$24 sps:$4 sm:$0xff]   ;;  %997 = vmatprep.subr.bf16.mxu1 %v1874_v12  ;;  %v1883_v16 = vld [vmem:[#allocation5 + $0x38] ss:$24 sps:$4 sm:$0xff]  }
  0xc1   : > { %947 = vmatpush1.bf16.msra.mxu0 %v1838_v3  ;;  %998 = vmatpush1.bf16.msra.mxu1 %v1877_v13  ;;  %v1853_v17 = vld [vmem:[#allocation5 + $0x120] ss:$24 sps:$4 sm:$0xff]   ;;  %v1854_v18 = vld [vmem:[#allocation5 + $0x154] ss:$24 sps:$4 sm:$0xff]   ;;  %v1856_v20 = vld [vmem:[#allocation5 + $0x150] ss:$24 sps:$4 sm:$0xff]  }
  0xc2   : > { %948 = vmatprep.subr.bf16.mxu0 %v1839_v4  ;;  %999 = vmatprep.subr.bf16.mxu1 %v1880_v15  ;;  %v1886_v19 = vld [vmem:[#allocation5 + $0x6c] ss:$24 sps:$4 sm:$0xff]   ;;  %v1889_v23 = vld [vmem:[#allocation5 + $0x68] ss:$24 sps:$4 sm:$0xff]   ;;  %v1892_v25 = vld [vmem:[#allocation5 + $0x9c] ss:$24 sps:$4 sm:$0xff]  }
  0xc3   : > { %v2545_v21 = vld [vmem:[%s2526_s18] sm:$0xff]  ;;  %v2548_v22 = vld [vmem:[%s2526_s18 + $0x8] sm:$0xff]  ;;  %v1897_v28 = vld [vmem:[#allocation5 + $0x98] ss:$24 sps:$4 sm:$0xff]   ;;  %vm1137_vm0 = vcmask 785408   ;;  %s2250_s28 = smov 16  }
  0xc4   : > { %v2552_v24 = vcombine.high %v2545_v21, %v2548_v22  ;;  %v1857_v26 = vld [vmem:[#allocation5 + $0x184] ss:$24 sps:$4 sm:$0xff]   ;;  %v1859_v27 = vld [vmem:[#allocation5 + $0x180] ss:$24 sps:$4 sm:$0xff]   ;;  %v1860_v30 = vld [vmem:[#allocation5 + $0x1b4] ss:$24 sps:$4 sm:$0xff]   ;;  %v2564_v61 = vcombine.low %v2545_v21, %v2548_v22 }
  0xc5   : > { %949 = vmatpush1.bf16.msra.mxu0 %v1841_v5  ;;  %1000 = vmatpush1.bf16.msra.mxu1 %v1883_v16  ;;  %v1898_v29 = vld [vmem:[#allocation5 + $0xcc] ss:$24 sps:$4 sm:$0xff]   ;;  %v1862_v31 = vld [vmem:[#allocation5 + $0x1b0] ss:$24 sps:$4 sm:$0xff]   ;;  %v1904_v33 = vld [vmem:[#allocation5 + $0xfc] ss:$24 sps:$4 sm:$0xff]  }
  0xc6   : > { %950 = vmatprep.subr.bf16.mxu0 %v1842_v6  ;;  %1001 = vmatprep.subr.bf16.mxu1 %v1886_v19  ;;  %v1903_v32 = vld [vmem:[#allocation5 + $0xc8] ss:$24 sps:$4 sm:$0xff]   ;;  %v1863_v34 = vld [vmem:[#allocation5 + $0x1e4] ss:$24 sps:$4 sm:$0xff]   ;;  %v1909_v36 = vld [vmem:[#allocation5 + $0xf8] ss:$24 sps:$4 sm:$0xff]  }
  0xc7   : > { %976 = vmatprep.mubr.bf16.mxu0 %v2552_v24  ;;  %1029 = vmatprep.mubr.bf16.mxu1 %v2552_v24  ;;  %v1865_v35 = vld [vmem:[#allocation5 + $0x1e0] ss:$24 sps:$4 sm:$0xff]   ;;  %v1910_v37 = vld [vmem:[#allocation5 + $0x12c] ss:$24 sps:$4 sm:$0xff]   ;;  %v1868_v39 = vld [vmem:[#allocation5 + $0x210] ss:$24 sps:$4 sm:$0xff]  }
  0xc8   : > { %v1866_v38 = vld [vmem:[#allocation5 + $0x214] ss:$24 sps:$4 sm:$0xff]   ;;  %v1915_v40 = vld [vmem:[#allocation5 + $0x128] ss:$24 sps:$4 sm:$0xff]   ;;  %v1869_v42 = vld [vmem:[#allocation5 + $0x244] ss:$24 sps:$4 sm:$0xff]  }
  0xc9   : > { %951 = vmatpush1.bf16.msra.mxu0 %v1844_v7  ;;  %1002 = vmatpush1.bf16.msra.mxu1 %v1889_v23  ;;  %v1916_v41 = vld [vmem:[#allocation5 + $0x15c] ss:$24 sps:$4 sm:$0xff]   ;;  %v1871_v43 = vld [vmem:[#allocation5 + $0x240] ss:$24 sps:$4 sm:$0xff]   ;;  %v1922_v45 = vld [vmem:[#allocation5 + $0x18c] ss:$24 sps:$4 sm:$0xff]  }
  0xca   : > { %952 = vmatprep.subr.bf16.mxu0 %v1845_v8  ;;  %1003 = vmatprep.subr.bf16.mxu1 %v1892_v25  ;;  %v1921_v44 = vld [vmem:[#allocation5 + $0x158] ss:$24 sps:$4 sm:$0xff]   ;;  %v1872_v46 = vld [vmem:[#allocation5 + $0x274] ss:$24 sps:$4 sm:$0xff]   ;;  %v1927_v48 = vld [vmem:[#allocation5 + $0x188] ss:$24 sps:$4 sm:$0xff]  }
  0xcb   : > { %v1876_v47 = vld [vmem:[#allocation5 + $0x270] ss:$24 sps:$4 sm:$0xff]   ;;  %v1928_v49 = vld [vmem:[#allocation5 + $0x1bc] ss:$24 sps:$4 sm:$0xff]   ;;  %v1882_v51 = vld [vmem:[#allocation5 + $0x2a0] ss:$24 sps:$4 sm:$0xff]  }
  0xcc   : > { %v1878_v50 = vld [vmem:[#allocation5 + $0x2a4] ss:$24 sps:$4 sm:$0xff]   ;;  %v1933_v52 = vld [vmem:[#allocation5 + $0x1b8] ss:$24 sps:$4 sm:$0xff]   ;;  %v1884_v54 = vld [vmem:[#allocation5 + $0x2d4] ss:$24 sps:$4 sm:$0xff]  }
  0xcd   : > { %953 = vmatpush1.bf16.msra.mxu0 %v1847_v9  ;;  %1004 = vmatpush1.bf16.msra.mxu1 %v1897_v28  ;;  %v1934_v53 = vld [vmem:[#allocation5 + $0x1ec] ss:$24 sps:$4 sm:$0xff]   ;;  %v1888_v55 = vld [vmem:[#allocation5 + $0x2d0] ss:$24 sps:$4 sm:$0xff]   ;;  %v1940_v57 = vld [vmem:[#allocation5 + $0x21c] ss:$24 sps:$4 sm:$0xff]  }
  0xce   : > { %954 = vmatprep.subr.bf16.mxu0 %v1848_v10  ;;  %1005 = vmatprep.subr.bf16.mxu1 %v1898_v29  ;;  %v1939_v56 = vld [vmem:[#allocation5 + $0x1e8] ss:$24 sps:$4 sm:$0xff]   ;;  %v1896_v58 = vld [vmem:[#allocation5 + $0x14] ss:$24 sps:$4 sm:$0xff]   ;;  %v2560_v60 = vld [vmem:[%s2526_s18 + $0x18] sm:$0xff]  ;;  %s2251_s17 = smov 112  }
  0xcf   : > { %v2557_v59 = vld [vmem:[%s2526_s18 + $0x10] sm:$0xff]  ;;  %v1902_v0 = vld [vmem:[#allocation5 + $0x44] ss:$24 sps:$4 sm:$0xff]   ;;  %v1951_v2 = vld [vmem:[#allocation5 + $0x248] ss:$24 sps:$4 sm:$0xff]   ;;  %s1556_s13 = sshll.u32 %s2522_s29, 6 }
  0xd0   : > { %v1894_v62 = vld [vmem:[#allocation5 + $0x10] ss:$24 sps:$4 sm:$0xff]   ;;  %v1946_v1 = vld [vmem:[#allocation5 + $0x24c] ss:$24 sps:$4 sm:$0xff]   ;;  %v2568_v3 = vcombine.high %v2557_v59, %v2560_v60  ;;  %v1900_v4 = vld [vmem:[#allocation5 + $0x40] ss:$24 sps:$4 sm:$0xff]   ;;  %v2574_v8 = vcombine.low %v2557_v59, %v2560_v60 }
  0xd1   : > { %955 = vmatpush1.bf16.msra.mxu0 %v1850_v11  ;;  %1006 = vmatpush1.bf16.msra.mxu1 %v1903_v32  ;;  %v1945_v63 = vld [vmem:[#allocation5 + $0x218] ss:$24 sps:$4 sm:$0xff]   ;;  %v1952_v5 = vld [vmem:[#allocation5 + $0x27c] ss:$24 sps:$4 sm:$0xff]   ;;  %v1958_v10 = vld [vmem:[#allocation5 + $0x2ac] ss:$24 sps:$4 sm:$0xff]  }
  0xd2   : > { %956 = vmatprep.subr.bf16.mxu0 %v1851_v14  ;;  %1007 = vmatprep.subr.bf16.mxu1 %v1904_v33  ;;  %v1908_v6 = vld [vmem:[#allocation5 + $0x74] ss:$24 sps:$4 sm:$0xff]   ;;  %v1957_v7 = vld [vmem:[#allocation5 + $0x278] ss:$24 sps:$4 sm:$0xff]   ;;  %v1914_v11 = vld [vmem:[#allocation5 + $0xa4] ss:$24 sps:$4 sm:$0xff]  }
  0xd3   : > { %v1906_v9 = vld [vmem:[#allocation5 + $0x70] ss:$24 sps:$4 sm:$0xff]   ;;  %v1912_v13 = vld [vmem:[#allocation5 + $0xa0] ss:$24 sps:$4 sm:$0xff]   ;;  %v1966_v14 = vld [vmem:[#allocation5 + $0x2dc] ss:$24 sps:$4 sm:$0xff]  }
  0xd4   : > { %v1963_v12 = vld [vmem:[#allocation5 + $0x2a8] ss:$24 sps:$4 sm:$0xff]   ;;  %v1920_v15 = vld [vmem:[#allocation5 + $0xd4] ss:$24 sps:$4 sm:$0xff]   ;;  %v1971_v16 = vld [vmem:[#allocation5 + $0x2d8] ss:$24 sps:$4 sm:$0xff]  }
  0xd5   : > { %957 = vmatpush1.bf16.msra.mxu0 %v1853_v17  ;;  %1008 = vmatpush1.bf16.msra.mxu1 %v1909_v36  ;;  %v1918_v17 = vld [vmem:[#allocation5 + $0xd0] ss:$24 sps:$4 sm:$0xff]   ;;  %v1924_v19 = vld [vmem:[#allocation5 + $0x100] ss:$24 sps:$4 sm:$0xff]   ;;  %v1950_v28 = vld [vmem:[#allocation5 + $0x1c4] ss:$24 sps:$4 sm:$0xff]  }
  0xd6   : > { %958 = vmatprep.subr.bf16.mxu0 %v1854_v18  ;;  %1009 = vmatprep.subr.bf16.mxu1 %v1910_v37  ;;  %v1926_v18 = vld [vmem:[#allocation5 + $0x104] ss:$24 sps:$4 sm:$0xff]   ;;  %v1930_v23 = vld [vmem:[#allocation5 + $0x130] ss:$24 sps:$4 sm:$0xff]   ;;  %v1936_v25 = vld [vmem:[#allocation5 + $0x160] ss:$24 sps:$4 sm:$0xff]  }
  0xd7   : > { %v1948_v29 = vld [vmem:[#allocation5 + $0x1c0] ss:$24 sps:$4 sm:$0xff]   ;;  %v1962_v32 = vld [vmem:[#allocation5 + $0x224] ss:$24 sps:$4 sm:$0xff]   ;;  %s2656_s16 = scalar_lea.vmem [#allocation13], %s1556_s13  ;;  %s1683_s14 = sshll.u32 %s2310_s27, 10 }
  0xd8   : > { %v1960_v33 = vld [vmem:[#allocation5 + $0x220] ss:$24 sps:$4 sm:$0xff]   ;;  %v1974_v36 = vld [vmem:[#allocation5 + $0x284] ss:$24 sps:$4 sm:$0xff]   ;;  %s1417_s25 = sshll.u32 %s2656_s16, 4  ;;  %s2675_s9 = scalar_lea.hbm %s2728_s6, %s1683_s14  ;;  %s2668_s25 = int_to_ptr.vmem [resolvable:$true] %s1417_s25 }
  0xd9   : > { %959 = vmatpush1.bf16.msra.mxu0 %v1856_v20  ;;  %1010 = vmatpush1.bf16.msra.mxu1 %v1915_v40  ;;  %v1932_v20 = vld [vmem:[#allocation5 + $0x134] ss:$24 sps:$4 sm:$0xff]   ;;  %v1972_v37 = vld [vmem:[#allocation5 + $0x280] ss:$24 sps:$4 sm:$0xff]   ;;  %v1980_v40 = vld [vmem:[#allocation5 + $0x2e4] ss:$24 sps:$4 sm:$0xff]  }
  0xda   : > { %960 = vmatprep.subr.bf16.mxu0 %v1857_v26  ;;  %1011 = vmatprep.subr.bf16.mxu1 %v1916_v41  ;;  %v1944_v26 = vld [vmem:[#allocation5 + $0x194] ss:$24 sps:$4 sm:$0xff]   ;;  %v1978_v41 = vld [vmem:[#allocation5 + $0x2e0] ss:$24 sps:$4 sm:$0xff]   ;;  %s1404_s7 = scalar_lea.sflag [#allocation4], %s2522_s29  ;;  %s2155_s27 = scalar_lea.vmem %s2668_s25, 1024 }
  0xdb   : > { %p2156_p2 = scmp.ne.s32.totalorder %s2668_s25, %s2155_s27  ;;  %p2753_p7 = scmp.ne.s32.totalorder %s2741_s8, 0 }
  0xdc   : > { %s2252_s26 = smov [#allocation13]  }
  0xdd   : > { %961 = vmatpush1.bf16.msra.mxu0 %v1859_v27  ;;  %1012 = vmatpush1.bf16.msra.mxu1 %v1921_v44  ;;  %v1942_v27 = vld [vmem:[#allocation5 + $0x190] ss:$24 sps:$4 sm:$0xff]   ;;  %p2157_p10 = pnand %p2156_p2, %p2753_p7  ;;  %s2159_s10 = sshll.u32 %s2252_s26, 4  ;;  %s2160_s10 = int_to_ptr.vmem [resolvable:$false] %s2159_s10 }
  0xde   : > { %962 = vmatprep.subr.bf16.mxu0 %v1860_v30  ;;  %1013 = vmatprep.subr.bf16.mxu1 %v1922_v45  ;;  %v1956_v30 = vld [vmem:[#allocation5 + $0x1f4] ss:$24 sps:$4 sm:$0xff]   ;;  %s2161_s11 = scalar_lea.vmem %s2160_s10, 2048  ;;  %p2162_p11 = scmp.lt.s32.totalorder %s2668_s25, %s2160_s10 }
  0xdf   : > { %p2158_p1 = pneg %p2157_p10  ;;  %p2163_p12 = scmp.lt.s32.totalorder %s2161_s11, %s2155_s27 }
  0xe1   : > { %963 = vmatpush1.bf16.msra.mxu0 %v1862_v31  ;;  %1014 = vmatpush1.bf16.msra.mxu1 %v1927_v48  ;;  %v1954_v31 = vld [vmem:[#allocation5 + $0x1f0] ss:$24 sps:$4 sm:$0xff]   ;;  %p2164_p13 = por %p2163_p12, %p2162_p11 }
  0xe2   : > { %964 = vmatprep.subr.bf16.mxu0 %v1863_v34  ;;  %1015 = vmatprep.subr.bf16.mxu1 %v1928_v49  ;;  %v1970_v34 = vld [vmem:[#allocation5 + $0x254] ss:$24 sps:$4 sm:$0xff]  }
  0xe3   : > { %p2165_p8 = pnand %p2164_p13, %p2158_p1 }
  0xe5   : > { %965 = vmatpush1.bf16.msra.mxu0 %v1865_v35  ;;  %1016 = vmatpush1.bf16.msra.mxu1 %v1933_v52  ;;  %v1968_v35 = vld [vmem:[#allocation5 + $0x250] ss:$24 sps:$4 sm:$0xff]  }
  0xe6   : > { %966 = vmatprep.subr.bf16.mxu0 %v1866_v38  ;;  %1017 = vmatprep.subr.bf16.mxu1 %v1934_v53  ;;  %v1977_v38 = vld [vmem:[#allocation5 + $0x2b4] ss:$24 sps:$4 sm:$0xff]  }
  0xe9   : > { %967 = vmatpush1.bf16.msra.mxu0 %v1868_v39  ;;  %1018 = vmatpush1.bf16.msra.mxu1 %v1939_v56  ;;  %v1975_v39 = vld [vmem:[#allocation5 + $0x2b0] ss:$24 sps:$4 sm:$0xff]  }
  0xea   : > { %968 = vmatprep.subr.bf16.mxu0 %v1869_v42  ;;  %1019 = vmatprep.subr.bf16.mxu1 %v1940_v57  ;;  %v2249_v42 = vmov 0  }
  0xed   : > { %969 = vmatpush1.bf16.msra.mxu0 %v1871_v43  ;;  %1020 = vmatpush1.bf16.msra.mxu1 %v1945_v63 }
  0xee   : > { %970 = vmatprep.subr.bf16.mxu0 %v1872_v46  ;;  %1021 = vmatprep.subr.bf16.mxu1 %v1946_v1 }
  0xf1   : > { %971 = vmatpush1.bf16.msra.mxu0 %v1876_v47  ;;  %1022 = vmatpush1.bf16.msra.mxu1 %v1951_v2 }
  0xf2   : > { %972 = vmatprep.subr.bf16.mxu0 %v1878_v50  ;;  %1023 = vmatprep.subr.bf16.mxu1 %v1952_v5 }
  0xf5   : > { %973 = vmatpush1.bf16.msra.mxu0 %v1882_v51  ;;  %1024 = vmatpush1.bf16.msra.mxu1 %v1957_v7 }
  0xf6   : > { %974 = vmatprep.subr.bf16.mxu0 %v1884_v54  ;;  %1025 = vmatprep.subr.bf16.mxu1 %v1958_v10 }
  0xf9   : > { %975 = vmatpush1.bf16.msra.mxu0 %v1888_v55  ;;  %1026 = vmatpush1.bf16.msra.mxu1 %v1963_v12 }
  0xfa   : > { %1050 = vmatprep.subr.bf16.mxu0 %v1896_v58  ;;  %1027 = vmatprep.subr.bf16.mxu1 %v1966_v14 }
  0xfc   : > { %977 = vmatmul.mubr.bf16.vlgmr.msra.gmra.mrb[0].mxu0 %v2564_v61 }
  0xfd   : > { %1051 = vmatpush1.bf16.msra.mxu0 %v1894_v62  ;;  %986 = vmatprep.mubr.bf16.mxu0 %v2568_v3 }
  0xfe   : > { %1052 = vmatprep.subr.bf16.mxu0 %v1902_v0  ;;  %1028 = vmatpush1.bf16.msra.mxu1 %v1971_v16 }
 0x101   : > { %1053 = vmatpush1.bf16.msra.mxu0 %v1900_v4  ;;  %1030 = vmatmul.mubr.bf16.vlgmr.msra.gmra.mrb[0].mxu1 %v2564_v61 }
 0x102   : > { %1054 = vmatprep.subr.bf16.mxu0 %v1908_v6  ;;  %1039 = vmatprep.mubr.bf16.mxu1 %v2568_v3 }
 0x104   : > { %987 = vmatmul.mubr.bf16.gmra.mrb[4].mxu0 %v2574_v8 }
 0x105   : > { %1055 = vmatpush1.bf16.msra.mxu0 %v1906_v9  ;;  %1082 = vmatprep.mubr.bf16.mxu0 %v2552_v24  ;;  %v1938_v24 = vld [vmem:[#allocation5 + $0x164] ss:$24 sps:$4 sm:$0xff]  }
 0x106   : > { %1056 = vmatprep.subr.bf16.mxu0 %v1914_v11 }
 0x109   : > { %1057 = vmatpush1.bf16.msra.mxu0 %v1912_v13  ;;  %1040 = vmatmul.mubr.bf16.gmra.mrb[4].mxu1 %v2574_v8 }
 0x10a   : > { %1058 = vmatprep.subr.bf16.mxu0 %v1920_v15  ;;  %1176 = vmatprep.mubr.bf16.mxu1 %v2249_v42 }
 0x10d   : > { %1059 = vmatpush1.bf16.msra.mxu0 %v1918_v17  ;;  %v1981_v17 = vld [vmem:[#allocation7] sm:$0xff]  }
 0x10e   : > { %1060 = vmatprep.subr.bf16.mxu0 %v1926_v18  ;;  %v1982_v18 = vld [vmem:[#allocation7 + $0x8] sm:$0xff]  }
 0x111   : > { %1061 = vmatpush1.bf16.msra.mxu0 %v1924_v19  ;;  %v1119_v19 = vld [vmem:[#allocation8] sm:$0xff] }
 0x112   : > { %1062 = vmatprep.subr.bf16.mxu0 %v1932_v20  ;;  %v1120_v20 = vld [vmem:[#allocation8 + $0x8] sm:$0xff] }
 0x115   : > { %1063 = vmatpush1.bf16.msra.mxu0 %v1930_v23 }
 0x116   : > { %1064 = vmatprep.subr.bf16.mxu0 %v1938_v24  ;;  %v1121_v24 = vld [vmem:[#allocation8 + $0x10] sm:$0xff] }
 0x119   : > { %1065 = vmatpush1.bf16.msra.mxu0 %v1936_v25 }
 0x11a   : > { %1066 = vmatprep.subr.bf16.mxu0 %v1944_v26 }
 0x11d   : > { %1067 = vmatpush1.bf16.msra.mxu0 %v1942_v27  ;;  %v1122_v27 = vld [vmem:[#allocation8 + $0x18] sm:$0xff] }
 0x11e   : > { %1068 = vmatprep.subr.bf16.mxu0 %v1950_v28 }
 0x121   : > { %1069 = vmatpush1.bf16.msra.mxu0 %v1948_v29 }
 0x122   : > { %1070 = vmatprep.subr.bf16.mxu0 %v1956_v30 }
 0x125   : > { %1071 = vmatpush1.bf16.msra.mxu0 %v1954_v31 }
 0x126   : > { %1072 = vmatprep.subr.bf16.mxu0 %v1962_v32 }
 0x129   : > { %1073 = vmatpush1.bf16.msra.mxu0 %v1960_v33 }
 0x12a   : > { %1074 = vmatprep.subr.bf16.mxu0 %v1970_v34 }
 0x12d   : > { %1075 = vmatpush1.bf16.msra.mxu0 %v1968_v35 }
 0x12e   : > { %1076 = vmatprep.subr.bf16.mxu0 %v1974_v36 }
 0x131   : > { %1077 = vmatpush1.bf16.msra.mxu0 %v1972_v37  ;;  %v1123_v37 = vld [vmem:[#allocation8 + $0x20] sm:$0xff] }
 0x132   : > { %1078 = vmatprep.subr.bf16.mxu0 %v1977_v38 }
 0x135   : > { %1079 = vmatpush1.bf16.msra.mxu0 %v1975_v39  ;;  %v1124_v39 = vld [vmem:[#allocation8 + $0x28] sm:$0xff] }
 0x136   : > { %1080 = vmatprep.subr.bf16.mxu0 %v1980_v40 }
 0x139   : > { %1081 = vmatpush1.bf16.msra.mxu0 %v1978_v41 }
 0x13c   : > { %1083 = vmatmul.mubr.bf16.vlgmr.msra.gmra.mrb[8].mxu0 %v2564_v61 }
 0x13d   : > { %1092 = vmatprep.mubr.bf16.mxu0 %v2568_v3 }
 0x144   : > { %1093 = vmatmul.mubr.bf16.gmra.mrb[12].mxu0 %v2574_v8 }
 0x1cf   : > { %v978_v43 = vpop.f32.mrb[0].mxu0 }
 0x1d0   : > { %v980_v44 = vpop.f32.mrb[1].mxu0 }
 0x1d1   : > { %v982_v45 = vpop.f32.mrb[2].mxu0 }
 0x1d2   : > { %v1103_v46 = vpack.c.bf16 %v982_v45, %v978_v43  ;;  %v984_v47 = vpop.f32.mrb[3].mxu0  ;;  %v1125_v43 = vld [vmem:[#allocation8 + $0x30] sm:$0xff] }
 0x1d3   : > { %v1104_v48 = vpack.c.bf16 %v984_v47, %v980_v44 }
 0x1d4   : > { %v1031_v55 = vpop.f32.mrb[0].mxu1 }
 0x1d5   : > { %1144 = vmatprep.subr.bf16.mxu1 %v1104_v48  ;;  %v1033_v56 = vpop.f32.mrb[1].mxu1  ;;  %v1126_v48 = vld [vmem:[#allocation8 + $0x38] sm:$0xff] }
 0x1d6   : > { %1145 = vmatpush1.bf16.msra.mxu1 %v1103_v46  ;;  %v1035_v57 = vpop.f32.mrb[2].mxu1 }
 0x1d7   : > { %v988_v49 = vpop.f32.mrb[4].mxu0  ;;  %v1107_v58 = vpack.c.bf16 %v1035_v57, %v1031_v55  ;;  %v1037_v61 = vpop.f32.mrb[3].mxu1 }
 0x1d8   : > { %v990_v50 = vpop.f32.mrb[5].mxu0  ;;  %v1108_v62 = vpack.c.bf16 %v1037_v61, %v1033_v56 }
 0x1d9   : > { %v992_v51 = vpop.f32.mrb[6].mxu0 }
 0x1da   : > { %v1105_v52 = vpack.c.bf16 %v992_v51, %v988_v49  ;;  %v994_v53 = vpop.f32.mrb[7].mxu0 }
 0x1db   : > { %v1106_v54 = vpack.c.bf16 %v994_v53, %v990_v50 }
 0x1dc   : > { %v1041_v63 = vpop.f32.mrb[4].mxu1 }
 0x1dd   : > { %1146 = vmatprep.subr.bf16.mxu1 %v1106_v54  ;;  %v1043_v0 = vpop.f32.mrb[5].mxu1 }
 0x1de   : > { %1147 = vmatpush1.bf16.msra.mxu1 %v1105_v52  ;;  %v1045_v1 = vpop.f32.mrb[6].mxu1 }
 0x1df   : > { %1148 = vmatprep.subr.bf16.mxu1 %v1108_v62  ;;  %v1109_v2 = vpack.c.bf16 %v1045_v1, %v1041_v63  ;;  %v1047_v3 = vpop.f32.mrb[7].mxu1 }
 0x1e0   : > { %v1110_v4 = vpack.c.bf16 %v1047_v3, %v1043_v0  ;;  %v1205_v0 = vlaneseq }
 0x1e2   : > { %1149 = vmatpush1.bf16.msra.mxu1 %v1107_v58 }
 0x1e3   : > { %1150 = vmatprep.subr.bf16.mxu1 %v1110_v4 }
 0x1e6   : > { %1151 = vmatpush1.bf16.msra.mxu1 %v1109_v2  ;;  %v2599_v2 = vand.u32 127, %v1205_v0  ;;  %v1296_v0 = vld [vmem:[#allocation11 + $0x10] sm:$0xff] }
 0x1e8   : > { %vm1228_vm1 = vcmp.lt.s32.totalorder %v2599_v2, 16  ;;  %vm1208_vm2 = vcmp.ge.s32.totalorder %v2599_v2, 16  ;;  %vm1261_vm4 = vcmp.lt.s32.totalorder %v2599_v2, 112 }
 0x1e9   : > { %vm2611_vm3 = vmpackc.low %vm1208_vm2, %vm1208_vm2 }
 0x20f   : > { %v1084_v5 = vpop.f32.mrb[8].mxu0 }
 0x210   : > { %v1086_v6 = vpop.f32.mrb[9].mxu0 }
 0x211   : > { %v1088_v7 = vpop.f32.mrb[10].mxu0 }
 0x212   : > { %v1111_v8 = vpack.c.bf16 %v1088_v7, %v1084_v5  ;;  %v1090_v9 = vpop.f32.mrb[11].mxu0 }
 0x213   : > { %v1112_v10 = vpack.c.bf16 %v1090_v9, %v1086_v6 }
 0x215   : > { %1152 = vmatprep.subr.bf16.mxu1 %v1112_v10 }
 0x216   : > { %1153 = vmatpush1.bf16.msra.mxu1 %v1111_v8 }
 0x217   : > { %v1094_v11 = vpop.f32.mrb[12].mxu0 }
 0x218   : > { %v1096_v12 = vpop.f32.mrb[13].mxu0 }
 0x219   : > { %v1098_v13 = vpop.f32.mrb[14].mxu0 }
 0x21a   : > { %v1113_v14 = vpack.c.bf16 %v1098_v13, %v1094_v11  ;;  %v1100_v15 = vpop.f32.mrb[15].mxu0 }
 0x21b   : > { %v1114_v16 = vpack.c.bf16 %v1100_v15, %v1096_v12  ;;  %v1298_v15 = vld [vmem:[#allocation11 + $0x20] sm:$0xff] }
 0x21d   : > { %1154 = vmatprep.subr.bf16.mxu1 %v1114_v16 }
 0x21e   : > { %1155 = vmatpush1.bf16.msra.mxu1 %v1113_v14 }
 0x221   : > { %1659 = vmatmul.mubr.msk.bf16.vlgmr.msra.gmra.mrb[8].mxu1 %vm1137_vm0, %v1981_v17 }
 0x222   : > { %1186 = vmatprep.mubr.bf16.mxu1 %v2249_v42 }
 0x229   : > { %1660 = vmatmul.mubr.msk.bf16.gmra.mrb[12].mxu1 %vm1137_vm0, %v1982_v18 }
 0x22a   : > { %1350 = vmatprep.mubr.bf16.mxu1 %v2249_v42 }
 0x2f4   : > { %v1178_v23 = vpop.f32.mrb[8].mxu1 }
 0x2f5   : > { %v1179_v25 = vadd.f32 %v1178_v23, %v1119_v19  ;;  %v1180_v26 = vpop.f32.mrb[9].mxu1 }
 0x2f6   : > { %v1181_v28 = vadd.f32 %v1180_v26, %v1120_v20  ;;  %v1182_v29 = vpop.f32.mrb[10].mxu1 }
 0x2f7   : > { %v1183_v30 = vadd.f32 %v1182_v29, %v1121_v24  ;;  %v1184_v31 = vpop.f32.mrb[11].mxu1  ;;  %v1197_v33 = vmax.f32 %v1179_v25, 0.0 }
 0x2f8   : > { %v1185_v32 = vadd.f32 %v1184_v31, %v1122_v27  ;;  %v1198_v35 = vmax.f32 %v1181_v28, 0.0  ;;  %v1207_v31 = vadd.s32 128, %v2599_v2 }
 0x2f9   : > { %v1199_v34 = vmax.f32 %v1183_v30, 0.0 }
 0x2fa   : > { %v1200_v36 = vmax.f32 %v1185_v32, 0.0  ;;  %vm1211_vm5 = vcmp.lt.s32.totalorder %v1207_v31, 240 }
 0x2fb   : > { %v2589_v38 = vpack.c.bf16 %v1199_v34, %v1197_v33  ;;  %v1793_v40 = vpack.i.bf16 %v1199_v34, %v1197_v33  ;;  %vm1669_vm6 = vmpackc.low %vm1211_vm5, %vm1211_vm5 }
 0x2fc   : > { %v1188_v41 = vpop.f32.mrb[12].mxu1  ;;  %v1798_v44 = vpack.i.bf16 %v1200_v36, %v1198_v35  ;;  %v2591_v45 = vpack.c.bf16 %v1200_v36, %v1198_v35 }
 0x2fd   : > { %v1189_v46 = vadd.f32 %v1188_v41, %v1123_v37  ;;  %v1190_v47 = vpop.f32.mrb[13].mxu1  ;;  %1794 = vrot.lane.b32.xlu0 %v1793_v40, %s2250_s28 }
 0x2fe   : > { %v1191_v49 = vadd.f32 %v1190_v47, %v1124_v39  ;;  %v1192_v50 = vpop.f32.mrb[14].mxu1 }
 0x2ff   : > { %v1193_v51 = vadd.f32 %v1192_v50, %v1125_v43  ;;  %v1194_v52 = vpop.f32.mrb[15].mxu1  ;;  %v1201_v54 = vmax.f32 %v1189_v46, 0.0 }
 0x300   : > { %v1195_v53 = vadd.f32 %v1194_v52, %v1126_v48  ;;  %v1202_v56 = vmax.f32 %v1191_v49, 0.0 }
 0x301   : > { %v1203_v55 = vmax.f32 %v1193_v51, 0.0  ;;  %1799 = vrot.lane.b32.xlu0 %v1798_v44, %s2250_s28 }
 0x302   : > { %v1204_v57 = vmax.f32 %v1195_v53, 0.0 }
 0x303   : > { %v2595_v58 = vpack.c.bf16 %v1203_v55, %v1201_v54  ;;  %v1803_v61 = vpack.i.bf16 %v1203_v55, %v1201_v54  ;;  %v1983_v55 = vld [vmem:[#allocation10] sm:$0xff]  }
 0x304   : > { %v1808_v62 = vpack.i.bf16 %v1204_v57, %v1202_v56  ;;  %v1285_v63 = vpack.c.bf16 %v1204_v57, %v1202_v56  ;;  %v1984_v56 = vld [vmem:[#allocation10 + $0x8] sm:$0xff]   ;;  %v1294_v57 = vld [vmem:[#allocation11] sm:$0xff] }
 0x305   : > { %1804 = vrot.lane.b32.xlu1 %v1803_v61, %s2250_s28  ;;  %1814 = vrot.lane.b32.xlu0 %v1793_v40, %s2251_s17 }
 0x309   : > { %1809 = vrot.lane.b32.xlu1 %v1808_v62, %s2250_s28  ;;  %1824 = vrot.lane.b32.xlu0 %v1803_v61, %s2251_s17  ;;  %v1295_v61 = vld [vmem:[#allocation11 + $0x8] sm:$0xff] }
 0x30d   : > { %1819 = vrot.lane.b32.xlu1 %v1798_v44, %s2251_s17 }
 0x311   : > { %1829 = vrot.lane.b32.xlu1 %v1808_v62, %s2251_s17 }
 0x36f   : > { %v1795_v1 = vpop.permute.xlu0 %1794 }
 0x370   : > { %v1797_v4 = vunpack.i.h.bf16 %v1795_v1  ;;  %v1796_v5 = vunpack.i.l.bf16 %v1795_v1 }
 0x373   : > { %v1800_v3 = vpop.permute.xlu0 %1799 }
 0x374   : > { %v1802_v6 = vunpack.i.h.bf16 %v1800_v3  ;;  %v1801_v7 = vunpack.i.l.bf16 %v1800_v3  ;;  %v1373_v3 = vunpack.c.l.bf16 %v2548_v22 }
 0x376   : > { %v1233_v8 = vsel %vm1228_vm1, %v1801_v7, %v1796_v5  ;;  %v1234_v9 = vsel %vm1228_vm1, %v1802_v6, %v1797_v4  ;;  %v1229_v10 = vsel %vm1228_vm1, %v1796_v5, %v1801_v7  ;;  %v1230_v11 = vsel %vm1228_vm1, %v1797_v4, %v1802_v6  ;;  %v1297_v4 = vld [vmem:[#allocation11 + $0x18] sm:$0xff] }
 0x377   : > { %v1664_v12 = vpack.c.bf16 %v1234_v9, %v1233_v8  ;;  %v1805_v13 = vpop.permute.xlu1 %1804  ;;  %v1279_v14 = vpack.c.bf16 %v1230_v11, %v1229_v10  ;;  %v1815_v27 = vpop.permute.xlu0 %1814 }
 0x378   : > { %v1807_v17 = vunpack.i.h.bf16 %v1805_v13  ;;  %v1806_v18 = vunpack.i.l.bf16 %v1805_v13  ;;  %v1817_v35 = vunpack.i.h.bf16 %v1815_v27  ;;  %v1816_v36 = vunpack.i.l.bf16 %v1815_v27  ;;  %v1301_v27 = vld [vmem:[#allocation11 + $0x38] sm:$0xff] }
 0x379   : > { %1318 = vmatprep.subr.bf16.mxu1 %v1279_v14 }
 0x37a   : > { %1665 = vmatpush1.bf16.msk.msra.mxu1 %vm2611_vm3, %v1664_v12 }
 0x37b   : > { %v1810_v16 = vpop.permute.xlu1 %1809  ;;  %v1825_v37 = vpop.permute.xlu0 %1824 }
 0x37c   : > { %v1812_v19 = vunpack.i.h.bf16 %v1810_v16  ;;  %v1811_v20 = vunpack.i.l.bf16 %v1810_v16  ;;  %v1827_v44 = vunpack.i.h.bf16 %v1825_v37  ;;  %v1826_v46 = vunpack.i.l.bf16 %v1825_v37 }
 0x37e   : > { %v1235_v23 = vsel %vm1228_vm1, %v1811_v20, %v1806_v18  ;;  %v1236_v24 = vsel %vm1228_vm1, %v1812_v19, %v1807_v17  ;;  %v1231_v25 = vsel %vm1228_vm1, %v1806_v18, %v1811_v20  ;;  %v1232_v26 = vsel %vm1228_vm1, %v1807_v17, %v1812_v19  ;;  %v1299_v17 = vld [vmem:[#allocation11 + $0x28] sm:$0xff] }
 0x37f   : > { %v1667_v28 = vpack.c.bf16 %v1236_v24, %v1235_v23  ;;  %v1820_v29 = vpop.permute.xlu1 %1819  ;;  %v1281_v30 = vpack.c.bf16 %v1232_v26, %v1231_v25  ;;  %v1376_v20 = vunpack.c.h.bf16 %v2557_v59  ;;  %v1300_v23 = vld [vmem:[#allocation11 + $0x30] sm:$0xff]  ;;  %v1377_v26 = vunpack.c.l.bf16 %v2560_v60 }
 0x380   : > { %v1822_v32 = vunpack.i.h.bf16 %v1820_v29  ;;  %v1821_v33 = vunpack.i.l.bf16 %v1820_v29 }
 0x381   : > { %1320 = vmatprep.subr.bf16.mxu1 %v1281_v30  ;;  %v1378_v30 = vunpack.c.h.bf16 %v2560_v60 }
 0x382   : > { %1668 = vmatpush1.bf16.msk.msra.mxu1 %vm2611_vm3, %v1667_v28  ;;  %v1266_v39 = vsel %vm1261_vm4, %v1821_v33, %v1816_v36  ;;  %v1267_v40 = vsel %vm1261_vm4, %v1822_v32, %v1817_v35  ;;  %v1263_v47 = vsel %vm1261_vm4, %v1817_v35, %v1822_v32 }
 0x383   : > { %v1830_v34 = vpop.permute.xlu1 %1829  ;;  %1322 = vmatprep.subr.bf16.mxu1 %v2591_v45  ;;  %v1262_v45 = vsel %vm1261_vm4, %v1816_v36, %v1821_v33  ;;  %v1670_v48 = vpack.c.bf16 %v1267_v40, %v1266_v39 }
 0x384   : > { %v1832_v41 = vunpack.i.h.bf16 %v1830_v34  ;;  %v1831_v43 = vunpack.i.l.bf16 %v1830_v34 }
 0x386   : > { %1323 = vmatpush1.bf16.msra.mxu1 %v2589_v38  ;;  %v1268_v49 = vsel %vm1261_vm4, %v1831_v43, %v1826_v46  ;;  %v1269_v50 = vsel %vm1261_vm4, %v1832_v41, %v1827_v44  ;;  %v1286_v38 = vpack.c.bf16 %v1263_v47, %v1262_v45  ;;  %v1264_v51 = vsel %vm1261_vm4, %v1826_v46, %v1831_v43 }
 0x387   : > { %1324 = vmatprep.subr.bf16.mxu1 %v1285_v63  ;;  %v1265_v52 = vsel %vm1261_vm4, %v1827_v44, %v1832_v41  ;;  %v1673_v53 = vpack.c.bf16 %v1269_v50, %v1268_v49  ;;  %v1372_v63 = vunpack.c.h.bf16 %v2545_v21 }
 0x388   : > { %v1288_v54 = vpack.c.bf16 %v1265_v52, %v1264_v51 }
 0x38a   : > { %1325 = vmatpush1.bf16.msra.mxu1 %v2595_v58  ;;  %v1371_v58 = vunpack.c.l.bf16 %v2545_v21 }
 0x38b   : > { %1671 = vmatprep.subr.msk.bf16.mxu1 %vm1669_vm6, %v1670_v48 }
 0x38e   : > { %1327 = vmatpush1.bf16.msra.mxu1 %v1286_v38 }
 0x38f   : > { %1674 = vmatprep.subr.msk.bf16.mxu1 %vm1669_vm6, %v1673_v53 }
 0x392   : > { %1329 = vmatpush1.bf16.msra.mxu1 %v1288_v54 }
 0x395   : > { %1675 = vmatmul.mubr.msk.bf16.vlgmr.msra.gmra.mrb[16].mxu1 %vm1137_vm0, %v1983_v55 }
 0x396   : > { %1360 = vmatprep.mubr.bf16.mxu1 %v2249_v42  ;;  %v1374_v42 = vunpack.c.h.bf16 %v2548_v22  ;;  %v1375_v22 = vunpack.c.l.bf16 %v2557_v59 }
 0x39d   : > { %1676 = vmatmul.mubr.msk.bf16.gmra.mrb[20].mxu1 %vm1137_vm0, %v1984_v56 }
 0x468   : > { %v1352_v62 = vpop.f32.mrb[16].mxu1 }
 0x469   : > { %v1353_v1 = vadd.f32 %v1352_v62, %v1294_v57  ;;  %v1354_v2 = vpop.f32.mrb[17].mxu1 }
 0x46a   : > { %v1355_v5 = vadd.f32 %v1354_v2, %v1295_v61  ;;  %v1356_v6 = vpop.f32.mrb[18].mxu1 }
 0x46b   : > { %v1379_v7 = vadd.f32 %v1371_v58, %v1353_v1  ;;  %v1357_v8 = vadd.f32 %v1356_v6, %v1296_v0  ;;  %v1358_v9 = vpop.f32.mrb[19].mxu1 }
 0x46c   : > { %v1380_v10 = vadd.f32 %v1372_v63, %v1355_v5  ;;  %v1359_v11 = vadd.f32 %v1358_v9, %v1297_v4 }
 0x46d   : > { %v1387_v12 = vmax.f32 %v1379_v7, 0.0  ;;  %v1381_v13 = vadd.f32 %v1373_v3, %v1357_v8 }
 0x46e   : > { %v1388_v14 = vmax.f32 %v1380_v10, 0.0  ;;  %v1382_v21 = vadd.f32 %v1374_v42, %v1359_v11 }
 0x46f   : > { %1395 = vst [vmem:[%s2656_s16] sm:$0xff] %v1387_v12  ;;  %v1389_v16 = vmax.f32 %v1381_v13, 0.0 }
 0x470   : > { %1396 = vst [vmem:[%s2656_s16 + $0x8] sm:$0xff] %v1388_v14  ;;  %v1390_v18 = vmax.f32 %v1382_v21, 0.0  ;;  %v1362_v19 = vpop.f32.mrb[20].mxu1 }
 0x471   : > { %1397 = vst [vmem:[%s2656_s16 + $0x10] sm:$0xff] %v1389_v16  ;;  %v1363_v24 = vadd.f32 %v1362_v19, %v1298_v15  ;;  %v1364_v25 = vpop.f32.mrb[21].mxu1 }
 0x472   : > { %1398 = vst [vmem:[%s2656_s16 + $0x18] sm:$0xff] %v1390_v18  ;;  %v1365_v28 = vadd.f32 %v1364_v25, %v1299_v17  ;;  %v1366_v29 = vpop.f32.mrb[22].mxu1 }
 0x473   : > { %v1383_v31 = vadd.f32 %v1375_v22, %v1363_v24  ;;  %v1367_v32 = vadd.f32 %v1366_v29, %v1300_v23  ;;  %v1368_v33 = vpop.f32.mrb[23].mxu1 }
 0x474   : > { %v1384_v59 = vadd.f32 %v1376_v20, %v1365_v28  ;;  %v1369_v34 = vadd.f32 %v1368_v33, %v1301_v27 }
 0x475   : > { %v1391_v35 = vmax.f32 %v1383_v31, 0.0  ;;  %v1385_v36 = vadd.f32 %v1377_v26, %v1367_v32 }
 0x476   : > { %v1392_v37 = vmax.f32 %v1384_v59, 0.0  ;;  %v1386_v39 = vadd.f32 %v1378_v30, %v1369_v34 }
 0x477   : > { %1399 = vst [vmem:[%s2656_s16 + $0x20] sm:$0xff] %v1391_v35  ;;  %v1393_v60 = vmax.f32 %v1385_v36, 0.0 }
 0x478   : > { %1400 = vst [vmem:[%s2656_s16 + $0x28] sm:$0xff] %v1392_v37  ;;  %v1394_v40 = vmax.f32 %v1386_v39, 0.0 }
 0x479   : > { %1401 = vst [vmem:[%s2656_s16 + $0x30] sm:$0xff] %v1393_v60 }
 0x47a   : > { %1402 = vst [vmem:[%s2656_s16 + $0x38] sm:$0xff] %v1394_v40 }
 0x47b   : > { %2168 = shalt.err (!%p2165_p8)
}
 0x47c   : > { %s2169_s18 = scalar_lea.hbm %s2675_s9, 1024  ;;  %s2173_s16 = scalar_lea.hbm %s2728_s6, 2048 }
 0x47d   : > { %p2170_p6 = scmp.ne.s32.totalorder %s2675_s9, %s2169_s18  ;;  %p2174_p3 = scmp.lt.u32.totalorder %s2675_s9, %s2728_s6 }
 0x47e   : > { %p2175_p0 = scmp.lt.u32.totalorder %s2173_s16, %s2169_s18  ;;  %p2177_p2 = scmp.lt.u32.totalorder %s2169_s18, %s2675_s9 }
 0x47f   : > { %p2171_p9 = pnand %p2170_p6, %p2753_p7 }
 0x480   : > { %p2176_p5 = por %p2175_p0, %p2174_p3 }
 0x481   : > { %p2172_p4 = pneg %p2171_p9 }
 0x482   : > { %p2178_p10 = por %p2177_p2, %p2176_p5 }
 0x484   : > { %p2179_p1 = pnand %p2178_p10, %p2172_p4 }
 0x486   : > { %2182 = shalt.err (!%p2179_p1)
}
 0x487   : > { %s2253_s30 = smov 256  }
 0x488   : > { %1706 = dma.vmem_to_hbm [thread:$0]  (%p2753_p7), %s2668_s25, 1024, %s2675_s9, %s1404_s7, %s2253_s30, %s2253_s30, %s2250_s28  }
 0x489 PF: > { %s1432_s27 = sand.u32 1, %s2221_s21   ;;  %p2754_p11 = scmp.ne.s32.totalorder %s2742_s20, 0 }
 0x48a   : > { %p2755_p12 = scmp.ge.s32.totalorder %s2233_s24, 2  ;;  %s1433_s26 = scalar_lea.sflag [#allocation4], %s1432_s27 }
 0x48c   : > { %p1729_p13 = pnand %p2755_p12, %p2754_p11 }
 0x48e   : > { %2216 = dma.done.wait (!%p1729_p13), %s1433_s26, 1024  }
 0x48f   : > { %2218 = vsyncadd (!%p1729_p13), %s1433_s26, 4294966272  ;;  %p22_p8 = scmp.ge.s32.totalorder %s2449_s15, 4   ;;  %s2756_s21 = smov %s2225_s22 }
 0x490   : > { %s2757_s22 = smov %s2229_s23  ;;  %s2758_s23 = smov %s2461_s19 }
 0x491   : > { %s2759_s24 = smov %s2449_s15  ;;  %24 = sbr.rel (!%p22_p8) target bundleno = 8 (0x8), region = 109 }
 0x498   :  { %1438 = vsyncpa [#allocation3], 1 }
 0x499   :  { %1440 = vsyncpa [#allocation3 + $0x1], 1 }
 0x49a   :  { %1441 = vsyncpa [#allocation6], 1 }
 0x49b   :  { %1442 = vsyncpa [#allocation9], 1 }
 0x49c   :  { %1443 = vsyncpa [#allocation12], 1 }
 0x49d   :  { %1444 = vsyncpa [#allocation4], 1 }
 0x49e   :  { %1446 = vsyncpa [#allocation4 + $0x1], 1 }

// kernel: tpu_custom_call.1
= control target key start
LH: loop header
LB: loop body
LE: loop exit
PB: predicated region body
PF: predicated region fallthrough
CT: control target
= control target key end

     0   :  { %11 = vsyncpa [#allocation3], 0  ;;  %s2722_s0 = inlined_call_operand.hbm [shape: bf16[2,32,256], index: 0, kind: input, shape index: {}]   ;;  %s2723_s1 = inlined_call_operand.hbm [shape: bf16[256,768], index: 1, kind: input, shape index: {}]   ;;  %s2724_s2 = inlined_call_operand.hbm [shape: bf16[32,96], index: 2, kind: input, shape index: {}]   ;;  %s2725_s3 = inlined_call_operand.hbm [shape: f32[32,256], index: 3, kind: input, shape index: {}]   ;;  %s2726_s4 = inlined_call_operand.hbm [shape: bf16[32,96], index: 4, kind: input, shape index: {}]   ;;  %s2727_s5 = inlined_call_operand.hbm [shape: f32[32,256], index: 5, kind: input, shape index: {}]   ;;  %s2728_s6 = inlined_call_operand.hbm [shape: f32[2,32,256], index: 6, kind: output, shape index: {}]  }
   0x1   :  { %13 = vsyncpa [#allocation3 + $0x1], 0 }
   0x2   :  { %14 = vsyncpa [#allocation6], 0 }
   0x3   :  { %15 = vsyncpa [#allocation9], 0 }
   0x4   :  { %16 = vsyncpa [#allocation12], 0 }
   0x5   :  { %17 = vsyncpa [#allocation4], 0 }
   0x6   :  { %19 = vsyncpa [#allocation4 + $0x1], 0  ;;  %s2289_s21 = smov 0   ;;  %s2291_s22 = smov 0  }
   0x7   :  { %s2293_s23 = smov 0   ;;  %s2295_s24 = smov 0  }
   0x8 LB: > { %s2235_s25 = smov [#allocation5]   ;;  %s2310_s27 = sadd.s32 4294967295, %s2233_s24   ;;  %s2233_s24 = sphi %s2295_s24, %s2759_s24   ;;  %s2229_s23 = sphi %s2293_s23, %s2758_s23   ;;  %s2225_s22 = sphi %s2291_s22, %s2757_s22   ;;  %s2221_s21 = sphi %s2289_s21, %s2756_s21  }
   0x9   : > { %s199_s26 = sshll.u32 %s2235_s25, 4  ;;  %p1539_p0 = scmp.ge.s32.totalorder %s2233_s24, 1  ;;  %s2315_s26 = int_to_ptr.vmem [resolvable:$true] %s199_s26 }
   0xa   : > { %p2729_p1 = scmp.eq.s32.totalorder %s2310_s27, 0  ;;  %p187_p2 = scmp.lt.s32.totalorder %s2233_s24, 3 }
   0xb   : > { %s2236_s29 = smov [#allocation8]   ;;  %s2237_s8 = smov [#allocation7]  }
   0xc   : > { %p2317_p3 = pnand %p1539_p0, %p187_p2  ;;  %s225_s30 = sshll.u32 %s2236_s29, 4  ;;  %s2330_s30 = int_to_ptr.vmem [resolvable:$true] %s225_s30 }
   0xd   : > { %s2332_s9 = sshll.u32 %s2237_s8, 4  ;;  %s1985_s12 = scalar_lea.hbm %s2723_s1, 12288  ;;  %s213_s9 = int_to_ptr.vmem [resolvable:$true] %s2332_s9 }
   0xe   : > { %s2734_s28 = scalar_select %p2317_p3, 1, 0 }
   0xf   : > { %p1708_p5 = pneg %p2317_p3  ;;  %p1986_p7 = scmp.ne.s32.totalorder %s2723_s1, %s1985_s12 }
  0x10   : > { %p1992_p11 = scmp.lt.u32.totalorder %s1985_s12, %s2723_s1 }
  0x11   : > { %p2326_p6 = pnand %p1708_p5, %p2729_p1 }
  0x13   : > { %p2342_p8 = pneg %p2326_p6 }
  0x15   : > { %p1988_p9 = pnand %p2342_p8, %p1986_p7 }
  0x17   : > { %p1989_p10 = pneg %p1988_p9 }
  0x19   : > { %p1994_p12 = pnand %p1992_p11, %p1989_p10 }
  0x1b   : > { %1997 = shalt.err (!%p1994_p12)
}
  0x1c   : > { %s1998_s18 = scalar_lea.vmem %s2315_s26, 12288  ;;  %p2006_p5 = scmp.lt.s32.totalorder %s2315_s26, %s2315_s26 }
  0x1d   : > { %p1999_p13 = scmp.ne.s32.totalorder %s2315_s26, %s1998_s18  ;;  %p2007_p4 = scmp.lt.s32.totalorder %s1998_s18, %s1998_s18 }
  0x1f   : > { %p2001_p0 = pnand %p1999_p13, %p2342_p8  ;;  %p2008_p7 = por %p2007_p4, %p2006_p5 }
  0x21   : > { %p2002_p2 = pneg %p2001_p0 }
  0x23   : > { %p2009_p9 = pnand %p2008_p7, %p2002_p2 }
  0x25   : > { %2012 = shalt.err (!%p2009_p9)
}
  0x26   : > { %s2238_s19 = smov 384   ;;  %s2239_s20 = smov 24  }
  0x27   : > { %1711 = dma.hbm_to_vmem [thread:$0]  (!%p2326_p6), %s2723_s1, 12288, %s2315_s26, [#allocation6], %s2238_s19, %s2238_s19, %s2239_s20  }
  0x28   : > { %s2013_s11 = scalar_lea.hbm %s2725_s3, 1024 }
  0x29   : > { %p2014_p4 = scmp.ne.s32.totalorder %s2725_s3, %s2013_s11  ;;  %p2020_p12 = scmp.lt.u32.totalorder %s2013_s11, %s2725_s3 }
  0x2b   : > { %p2016_p10 = pnand %p2014_p4, %p2342_p8 }
  0x2d   : > { %p2017_p11 = pneg %p2016_p10 }
  0x2f   : > { %p2022_p13 = pnand %p2020_p12, %p2017_p11 }
  0x31   : > { %2025 = shalt.err (!%p2022_p13)
}
  0x32   : > { %s2026_s26 = scalar_lea.vmem %s2330_s30, 1024  ;;  %p2034_p7 = scmp.lt.s32.totalorder %s2330_s30, %s2330_s30 }
  0x33   : > { %p2027_p0 = scmp.ne.s32.totalorder %s2330_s30, %s2026_s26  ;;  %p2035_p9 = scmp.lt.s32.totalorder %s2026_s26, %s2026_s26 }
  0x35   : > { %p2029_p2 = pnand %p2027_p0, %p2342_p8  ;;  %p2036_p4 = por %p2035_p9, %p2034_p7 }
  0x37   : > { %p2030_p5 = pneg %p2029_p2 }
  0x39   : > { %p2037_p10 = pnand %p2036_p4, %p2030_p5 }
  0x3b   : > { %2040 = shalt.err (!%p2037_p10)
}
  0x3c   : > { %s2731_s17 = smov 256   ;;  %s2732_s18 = smov 16  }
  0x3d   : > { %1717 = dma.hbm_to_vmem [thread:$0]  (!%p2326_p6), %s2725_s3, 1024, %s2330_s30, [#allocation9], %s2731_s17, %s2731_s17, %s2732_s18  }
  0x3e   : > { %s2041_s8 = scalar_lea.hbm %s2724_s2, 256 }
  0x3f   : > { %p2042_p11 = scmp.ne.s32.totalorder %s2724_s2, %s2041_s8  ;;  %p2048_p0 = scmp.lt.u32.totalorder %s2041_s8, %s2724_s2 }
  0x41   : > { %p2044_p12 = pnand %p2042_p11, %p2342_p8 }
  0x43   : > { %p2045_p13 = pneg %p2044_p12 }
  0x45   : > { %p2050_p2 = pnand %p2048_p0, %p2045_p13 }
  0x47   : > { %2053 = shalt.err (!%p2050_p2)
}
  0x48   : > { %s2054_s14 = scalar_lea.vmem %s213_s9, 256  ;;  %p2062_p4 = scmp.lt.s32.totalorder %s213_s9, %s213_s9 }
  0x49   : > { %p2055_p5 = scmp.ne.s32.totalorder %s213_s9, %s2054_s14  ;;  %p2063_p10 = scmp.lt.s32.totalorder %s2054_s14, %s2054_s14 }
  0x4b   : > { %p2057_p7 = pnand %p2055_p5, %p2342_p8  ;;  %p2064_p1 = por %p2063_p10, %p2062_p4 }
  0x4d   : > { %p2058_p9 = pneg %p2057_p7 }
  0x4f   : > { %p2065_p3 = pnand %p2064_p1, %p2058_p9 }
  0x51   : > { %2068 = shalt.err (!%p2065_p3)
}
  0x52   : > { %s2242_s30 = smov 64   ;;  %s2243_s16 = smov 4  }
  0x53   : > { %1714 = dma.hbm_to_vmem [thread:$0]  (!%p2326_p6), %s2724_s2, 256, %s213_s9, [#allocation6], %s2242_s30, %s2242_s30, %s2243_s16  }
  0x54   : > { %s2244_s20 = smov [#allocation10]   ;;  %s2245_s29 = smov [#allocation11]  }
  0x55   : > { %s238_s25 = sshll.u32 %s2244_s20, 4  ;;  %s251_s8 = sshll.u32 %s2245_s29, 4  ;;  %s239_s25 = int_to_ptr.vmem [resolvable:$true] %s238_s25  ;;  %s252_s8 = int_to_ptr.vmem [resolvable:$true] %s251_s8 }
  0x56   : > { %s2069_s12 = scalar_lea.hbm %s2726_s4, 256 }
  0x57   : > { %p2070_p1 = scmp.ne.s32.totalorder %s2726_s4, %s2069_s12  ;;  %p2076_p12 = scmp.lt.u32.totalorder %s2069_s12, %s2726_s4 }
  0x59   : > { %p2072_p3 = pnand %p2070_p1, %p2342_p8 }
  0x5b   : > { %p2073_p11 = pneg %p2072_p3 }
  0x5d   : > { %p2078_p13 = pnand %p2076_p12, %p2073_p11 }
  0x5f   : > { %2081 = shalt.err (!%p2078_p13)
}
  0x60   : > { %s2082_s9 = scalar_lea.vmem %s239_s25, 256  ;;  %p2090_p7 = scmp.lt.s32.totalorder %s239_s25, %s239_s25 }
  0x61   : > { %p2083_p0 = scmp.ne.s32.totalorder %s239_s25, %s2082_s9  ;;  %p2091_p9 = scmp.lt.s32.totalorder %s2082_s9, %s2082_s9 }
  0x63   : > { %p2085_p2 = pnand %p2083_p0, %p2342_p8  ;;  %p2092_p4 = por %p2091_p9, %p2090_p7 }
  0x65   : > { %p2086_p5 = pneg %p2085_p2 }
  0x67   : > { %p2093_p10 = pnand %p2092_p4, %p2086_p5 }
  0x69   : > { %2096 = shalt.err (!%p2093_p10)
}
  0x6a   : > { %1720 = dma.hbm_to_vmem [thread:$0]  (!%p2326_p6), %s2726_s4, 256, %s239_s25, [#allocation9], %s2242_s30, %s2242_s30, %s2243_s16  }
  0x6b   : > { %s2097_s20 = scalar_lea.hbm %s2727_s5, 1024 }
  0x6c   : > { %p2098_p1 = scmp.ne.s32.totalorder %s2727_s5, %s2097_s20  ;;  %p2104_p12 = scmp.lt.u32.totalorder %s2097_s20, %s2727_s5 }
  0x6e   : > { %p2100_p3 = pnand %p2098_p1, %p2342_p8 }
  0x70   : > { %p2101_p11 = pneg %p2100_p3 }
  0x72   : > { %p2106_p13 = pnand %p2104_p12, %p2101_p11 }
  0x74   : > { %2109 = shalt.err (!%p2106_p13)
}
  0x75   : > { %s2110_s13 = scalar_lea.vmem %s252_s8, 1024  ;;  %p2118_p7 = scmp.lt.s32.totalorder %s252_s8, %s252_s8 }
  0x76   : > { %p2111_p0 = scmp.ne.s32.totalorder %s252_s8, %s2110_s13  ;;  %p2119_p9 = scmp.lt.s32.totalorder %s2110_s13, %s2110_s13 }
  0x78   : > { %p2113_p2 = pnand %p2111_p0, %p2342_p8  ;;  %p2120_p4 = por %p2119_p9, %p2118_p7 }
  0x7a   : > { %p2114_p5 = pneg %p2113_p2 }
  0x7c   : > { %p2121_p10 = pnand %p2120_p4, %p2114_p5 }
  0x7e   : > { %2124 = shalt.err (!%p2121_p10)
}
  0x7f   : > { %s2737_s30 = smov 16   ;;  %s2738_s16 = smov 256  }
  0x80   : > { %1723 = dma.hbm_to_vmem [thread:$0]  (!%p2326_p6), %s2727_s5, 1024, %s252_s8, [#allocation12], %s2738_s16, %s2738_s16, %s2737_s30  }
  0x81   : > { %s1538_s7 = sadd.s32 4294967294, %s2233_s24   ;;  %s2449_s15 = sadd.s32 1, %s2233_s24  }
  0x82   : > { %s32_s9 = sadd.s32 1, %s2229_s23  ;;  %s29_s26 = ssub.s32 %s2233_s24, %s2449_s15 }
  0x83   : > { %p39_p8 = scmp.ne.s32.totalorder %s2229_s23, %s2225_s22  ;;  %p30_p1 = scmp.eq.s32.totalorder %s29_s26, 0 }
  0x84   : > { %p40_p3 = scmp.eq.s32.totalorder %s2233_s24, 0  ;;  %p45_p11 = scmp.ne.s32.totalorder %s2225_s22, %s2221_s21 }
  0x85   : > { %p174_p12 = scmp.eq.s32.totalorder %s2310_s27, 1  ;;  %p2739_p0 = scmp.eq.s32.totalorder %s2310_s27, 0 }
  0x86   : > { %s2461_s19 = scalar_select %p30_p1, %s2229_s23, %s32_s9  }
  0x87   : > { %p41_p13 = por %p40_p3, %p39_p8  ;;  %p2465_p2 = por %p2739_p0, %p45_p11 }
  0x88   : > { %p2469_p6 = por %p174_p12, %p39_p8  ;;  %p180_p5 = scmp.eq.s32.totalorder %s1538_s7, 1 }
  0x89   : > { %p1737_p7 = scmp.lt.s32.totalorder %s2233_s24, 2  ;;  %s265_s18 = sand.u32 1, %s2229_s23  }
  0x8a   : > { %s2741_s8 = scalar_select %p2469_p6, 1, 0 }
  0x8b   : > { %p2475_p9 = por %p180_p5, %p45_p11  ;;  %s1546_s29 = sshll.u32 %s265_s18, 5 }
  0x8c   : > { %s1682_s10 = sshll.u32 %s2233_s24, 9  ;;  %s269_s30 = scalar_lea.vmem [#allocation2], %s1546_s29 }
  0x8d   : > { %s2742_s20 = scalar_select %p2475_p9, 1, 0 }
  0x8e   : > { %s2483_s13 = scalar_lea.hbm %s2722_s0, %s1682_s10  ;;  %s276_s16 = sshll.u32 %s269_s30, 4  ;;  %s2489_s16 = int_to_ptr.vmem [resolvable:$true] %s276_s16 }
  0x8f   : > { %p2485_p4 = pnand %p1737_p7, %p41_p13  ;;  %s2491_s14 = scalar_lea.sflag [#allocation3], %s265_s18 }
  0x90   : > { %s2125_s7 = scalar_lea.hbm %s2483_s13, 512  ;;  %s2130_s29 = scalar_lea.hbm %s2722_s0, 1024 }
  0x91   : > { %p2126_p10 = scmp.ne.s32.totalorder %s2483_s13, %s2125_s7  ;;  %p2127_p8 = pneg %p2485_p4 }
  0x92   : > { %p2131_p11 = scmp.lt.u32.totalorder %s2483_s13, %s2722_s0  ;;  %p2132_p12 = scmp.lt.u32.totalorder %s2130_s29, %s2125_s7 }
  0x93   : > { %p2128_p1 = pnand %p2127_p8, %p2126_p10  ;;  %p2134_p0 = scmp.lt.u32.totalorder %s2125_s7, %s2483_s13 }
  0x94   : > { %p2133_p13 = por %p2132_p12, %p2131_p11 }
  0x95   : > { %p2129_p3 = pneg %p2128_p1 }
  0x96   : > { %p2135_p5 = por %p2134_p0, %p2133_p13 }
  0x98   : > { %p2136_p7 = pnand %p2135_p5, %p2129_p3 }
  0x9a   : > { %2139 = shalt.err (!%p2136_p7)
}
  0x9b   : > { %s2140_s18 = scalar_lea.vmem %s2489_s16, 512  ;;  %s2246_s12 = smov [#allocation2]  }
  0x9c   : > { %p2141_p10 = scmp.ne.s32.totalorder %s2489_s16, %s2140_s18  ;;  %s2145_s30 = sshll.u32 %s2246_s12, 4  ;;  %s2146_s30 = int_to_ptr.vmem [resolvable:$false] %s2145_s30 }
  0x9d   : > { %s2147_s9 = scalar_lea.vmem %s2146_s30, 1024  ;;  %p2148_p6 = scmp.lt.s32.totalorder %s2489_s16, %s2146_s30 }
  0x9e   : > { %p2143_p1 = pnand %p2141_p10, %p2127_p8  ;;  %p2149_p11 = scmp.lt.s32.totalorder %s2147_s9, %s2140_s18 }
  0xa0   : > { %p2144_p9 = pneg %p2143_p1  ;;  %p2150_p12 = por %p2149_p11, %p2148_p6 }
  0xa2   : > { %p2151_p13 = pnand %p2150_p12, %p2144_p9 }
  0xa4   : > { %2154 = shalt.err (!%p2151_p13)
}
  0xa5   : > { %s2247_s7 = smov 128   ;;  %s2248_s26 = smov 8  }
  0xa6   : > { %1727 = dma.hbm_to_vmem [thread:$0]  (!%p2485_p4), %s2483_s13, 512, %s2489_s16, %s2491_s14, %s2247_s7, %s2247_s7, %s2248_s26  }
  0xa7   : > { %p2744_p8 = scmp.ne.s32.totalorder %s2734_s28, 0 }
  0xa8   : > { %s2522_s29 = sand.u32 (!%p2744_p8), 1, %s2225_s22  }
  0xa9   : > { %288 = sbr.rel (%p2744_p8) target bundleno = 1161 (0x489), region = 44  ;;  %s1550_s10 = sshll.u32 (!%p2744_p8), %s2522_s29, 5 }
  0xaa   : > { %s291_s11 = scalar_lea.sflag (!%p2744_p8), [#allocation3], %s2522_s29  ;;  %s2526_s18 = scalar_lea.vmem (!%p2744_p8), [#allocation2], %s1550_s10 }
  0xb0   : > { %2200 = dma.done.wait (%p2465_p2), %s291_s11, 512  }
  0xb1   : > { %2202 = vsyncadd (%p2465_p2), %s291_s11, 4294966784  ;;  %p2745_p6 = scmp.eq.s32.totalorder %s2310_s27, 0 }
  0xb3   : > { %2204 = dma.done.wait (%p2745_p6), [#allocation6], 12544   ;;  %p2746_p9 = pmov %p2745_p6 }
  0xb4   : > { %p2747_p4 = pmov %p2745_p6 }
  0xb5   : > { %2206 = vsyncadd (%p2746_p9), [#allocation6], 4294954752 }
  0xb6   : > { %2208 = dma.done.wait (%p2747_p4), [#allocation9], 1280   ;;  %p2748_p3 = pmov %p2747_p4 }
  0xb8   : > { %2210 = vsyncadd (%p2748_p3), [#allocation9], 4294966016  ;;  %p2749_p0 = pmov %p2748_p3 }
  0xba   : > { %2212 = dma.done.wait (%p2749_p0), [#allocation12], 1024   ;;  %p2750_p5 = pmov %p2749_p0 }
  0xbb   : > { %v1833_v0 = vld [vmem:[#allocation5 + $0x4] ss:$24 sps:$4 sm:$0xff]   ;;  %v1835_v1 = vld [vmem:[#allocation5] ss:$24 sps:$4 sm:$0xff]   ;;  %v1836_v2 = vld [vmem:[#allocation5 + $0x34] ss:$24 sps:$4 sm:$0xff]  }
  0xbc   : > { %2214 = vsyncadd (%p2750_p5), [#allocation12], 4294966272  ;;  %944 = vmatprep.subr.bf16.mxu0 %v1833_v0  ;;  %v1838_v3 = vld [vmem:[#allocation5 + $0x30] ss:$24 sps:$4 sm:$0xff]   ;;  %v1839_v4 = vld [vmem:[#allocation5 + $0x64] ss:$24 sps:$4 sm:$0xff]  }
  0xbd   : > { %945 = vmatpush1.bf16.msra.mxu0 %v1835_v1  ;;  %v1841_v5 = vld [vmem:[#allocation5 + $0x60] ss:$24 sps:$4 sm:$0xff]   ;;  %v1842_v6 = vld [vmem:[#allocation5 + $0x94] ss:$24 sps:$4 sm:$0xff]   ;;  %v1844_v7 = vld [vmem:[#allocation5 + $0x90] ss:$24 sps:$4 sm:$0xff]  }
  0xbe   : > { %946 = vmatprep.subr.bf16.mxu0 %v1836_v2  ;;  %v1845_v8 = vld [vmem:[#allocation5 + $0xc4] ss:$24 sps:$4 sm:$0xff]   ;;  %v1847_v9 = vld [vmem:[#allocation5 + $0xc0] ss:$24 sps:$4 sm:$0xff]   ;;  %v1848_v10 = vld [vmem:[#allocation5 + $0xf4] ss:$24 sps:$4 sm:$0xff]  }
  0xbf   : > { %v1850_v11 = vld [vmem:[#allocation5 + $0xf0] ss:$24 sps:$4 sm:$0xff]   ;;  %v1874_v12 = vld [vmem:[#allocation5 + $0xc] ss:$24 sps:$4 sm:$0xff]   ;;  %v1880_v15 = vld [vmem:[#allocation5 + $0x3c] ss:$24 sps:$4 sm:$0xff]  }
  0xc0   : > { %v1877_v13 = vld [vmem:[#allocation5 + $0x8] ss:$24 sps:$4 sm:$0xff]   ;;  %v1851_v14 = vld [vmem:[#allocation5 + $0x124] ss:$24 sps:$4 sm:$0xff]   ;;  %997 = vmatprep.subr.bf16.mxu1 %v1874_v12  ;;  %v1883_v16 = vld [vmem:[#allocation5 + $0x38] ss:$24 sps:$4 sm:$0xff]  }
  0xc1   : > { %947 = vmatpush1.bf16.msra.mxu0 %v1838_v3  ;;  %998 = vmatpush1.bf16.msra.mxu1 %v1877_v13  ;;  %v1853_v17 = vld [vmem:[#allocation5 + $0x120] ss:$24 sps:$4 sm:$0xff]   ;;  %v1854_v18 = vld [vmem:[#allocation5 + $0x154] ss:$24 sps:$4 sm:$0xff]   ;;  %v1856_v20 = vld [vmem:[#allocation5 + $0x150] ss:$24 sps:$4 sm:$0xff]  }
  0xc2   : > { %948 = vmatprep.subr.bf16.mxu0 %v1839_v4  ;;  %999 = vmatprep.subr.bf16.mxu1 %v1880_v15  ;;  %v1886_v19 = vld [vmem:[#allocation5 + $0x6c] ss:$24 sps:$4 sm:$0xff]   ;;  %v1889_v23 = vld [vmem:[#allocation5 + $0x68] ss:$24 sps:$4 sm:$0xff]   ;;  %v1892_v25 = vld [vmem:[#allocation5 + $0x9c] ss:$24 sps:$4 sm:$0xff]  }
  0xc3   : > { %v2545_v21 = vld [vmem:[%s2526_s18] sm:$0xff]  ;;  %v2548_v22 = vld [vmem:[%s2526_s18 + $0x8] sm:$0xff]  ;;  %v1897_v28 = vld [vmem:[#allocation5 + $0x98] ss:$24 sps:$4 sm:$0xff]   ;;  %vm1137_vm0 = vcmask 785408   ;;  %s2250_s28 = smov 16  }
  0xc4   : > { %v2552_v24 = vcombine.high %v2545_v21, %v2548_v22  ;;  %v1857_v26 = vld [vmem:[#allocation5 + $0x184] ss:$24 sps:$4 sm:$0xff]   ;;  %v1859_v27 = vld [vmem:[#allocation5 + $0x180] ss:$24 sps:$4 sm:$0xff]   ;;  %v1860_v30 = vld [vmem:[#allocation5 + $0x1b4] ss:$24 sps:$4 sm:$0xff]   ;;  %v2564_v61 = vcombine.low %v2545_v21, %v2548_v22 }
  0xc5   : > { %949 = vmatpush1.bf16.msra.mxu0 %v1841_v5  ;;  %1000 = vmatpush1.bf16.msra.mxu1 %v1883_v16  ;;  %v1898_v29 = vld [vmem:[#allocation5 + $0xcc] ss:$24 sps:$4 sm:$0xff]   ;;  %v1862_v31 = vld [vmem:[#allocation5 + $0x1b0] ss:$24 sps:$4 sm:$0xff]   ;;  %v1904_v33 = vld [vmem:[#allocation5 + $0xfc] ss:$24 sps:$4 sm:$0xff]  }
  0xc6   : > { %950 = vmatprep.subr.bf16.mxu0 %v1842_v6  ;;  %1001 = vmatprep.subr.bf16.mxu1 %v1886_v19  ;;  %v1903_v32 = vld [vmem:[#allocation5 + $0xc8] ss:$24 sps:$4 sm:$0xff]   ;;  %v1863_v34 = vld [vmem:[#allocation5 + $0x1e4] ss:$24 sps:$4 sm:$0xff]   ;;  %v1909_v36 = vld [vmem:[#allocation5 + $0xf8] ss:$24 sps:$4 sm:$0xff]  }
  0xc7   : > { %976 = vmatprep.mubr.bf16.mxu0 %v2552_v24  ;;  %1029 = vmatprep.mubr.bf16.mxu1 %v2552_v24  ;;  %v1865_v35 = vld [vmem:[#allocation5 + $0x1e0] ss:$24 sps:$4 sm:$0xff]   ;;  %v1910_v37 = vld [vmem:[#allocation5 + $0x12c] ss:$24 sps:$4 sm:$0xff]   ;;  %v1868_v39 = vld [vmem:[#allocation5 + $0x210] ss:$24 sps:$4 sm:$0xff]  }
  0xc8   : > { %v1866_v38 = vld [vmem:[#allocation5 + $0x214] ss:$24 sps:$4 sm:$0xff]   ;;  %v1915_v40 = vld [vmem:[#allocation5 + $0x128] ss:$24 sps:$4 sm:$0xff]   ;;  %v1869_v42 = vld [vmem:[#allocation5 + $0x244] ss:$24 sps:$4 sm:$0xff]  }
  0xc9   : > { %951 = vmatpush1.bf16.msra.mxu0 %v1844_v7  ;;  %1002 = vmatpush1.bf16.msra.mxu1 %v1889_v23  ;;  %v1916_v41 = vld [vmem:[#allocation5 + $0x15c] ss:$24 sps:$4 sm:$0xff]   ;;  %v1871_v43 = vld [vmem:[#allocation5 + $0x240] ss:$24 sps:$4 sm:$0xff]   ;;  %v1922_v45 = vld [vmem:[#allocation5 + $0x18c] ss:$24 sps:$4 sm:$0xff]  }
  0xca   : > { %952 = vmatprep.subr.bf16.mxu0 %v1845_v8  ;;  %1003 = vmatprep.subr.bf16.mxu1 %v1892_v25  ;;  %v1921_v44 = vld [vmem:[#allocation5 + $0x158] ss:$24 sps:$4 sm:$0xff]   ;;  %v1872_v46 = vld [vmem:[#allocation5 + $0x274] ss:$24 sps:$4 sm:$0xff]   ;;  %v1927_v48 = vld [vmem:[#allocation5 + $0x188] ss:$24 sps:$4 sm:$0xff]  }
  0xcb   : > { %v1876_v47 = vld [vmem:[#allocation5 + $0x270] ss:$24 sps:$4 sm:$0xff]   ;;  %v1928_v49 = vld [vmem:[#allocation5 + $0x1bc] ss:$24 sps:$4 sm:$0xff]   ;;  %v1882_v51 = vld [vmem:[#allocation5 + $0x2a0] ss:$24 sps:$4 sm:$0xff]  }
  0xcc   : > { %v1878_v50 = vld [vmem:[#allocation5 + $0x2a4] ss:$24 sps:$4 sm:$0xff]   ;;  %v1933_v52 = vld [vmem:[#allocation5 + $0x1b8] ss:$24 sps:$4 sm:$0xff]   ;;  %v1884_v54 = vld [vmem:[#allocation5 + $0x2d4] ss:$24 sps:$4 sm:$0xff]  }
  0xcd   : > { %953 = vmatpush1.bf16.msra.mxu0 %v1847_v9  ;;  %1004 = vmatpush1.bf16.msra.mxu1 %v1897_v28  ;;  %v1934_v53 = vld [vmem:[#allocation5 + $0x1ec] ss:$24 sps:$4 sm:$0xff]   ;;  %v1888_v55 = vld [vmem:[#allocation5 + $0x2d0] ss:$24 sps:$4 sm:$0xff]   ;;  %v1940_v57 = vld [vmem:[#allocation5 + $0x21c] ss:$24 sps:$4 sm:$0xff]  }
  0xce   : > { %954 = vmatprep.subr.bf16.mxu0 %v1848_v10  ;;  %1005 = vmatprep.subr.bf16.mxu1 %v1898_v29  ;;  %v1939_v56 = vld [vmem:[#allocation5 + $0x1e8] ss:$24 sps:$4 sm:$0xff]   ;;  %v1896_v58 = vld [vmem:[#allocation5 + $0x14] ss:$24 sps:$4 sm:$0xff]   ;;  %v2560_v60 = vld [vmem:[%s2526_s18 + $0x18] sm:$0xff]  ;;  %s2251_s17 = smov 112  }
  0xcf   : > { %v2557_v59 = vld [vmem:[%s2526_s18 + $0x10] sm:$0xff]  ;;  %v1902_v0 = vld [vmem:[#allocation5 + $0x44] ss:$24 sps:$4 sm:$0xff]   ;;  %v1951_v2 = vld [vmem:[#allocation5 + $0x248] ss:$24 sps:$4 sm:$0xff]   ;;  %s1556_s13 = sshll.u32 %s2522_s29, 6 }
  0xd0   : > { %v1894_v62 = vld [vmem:[#allocation5 + $0x10] ss:$24 sps:$4 sm:$0xff]   ;;  %v1946_v1 = vld [vmem:[#allocation5 + $0x24c] ss:$24 sps:$4 sm:$0xff]   ;;  %v2568_v3 = vcombine.high %v2557_v59, %v2560_v60  ;;  %v1900_v4 = vld [vmem:[#allocation5 + $0x40] ss:$24 sps:$4 sm:$0xff]   ;;  %v2574_v8 = vcombine.low %v2557_v59, %v2560_v60 }
  0xd1   : > { %955 = vmatpush1.bf16.msra.mxu0 %v1850_v11  ;;  %1006 = vmatpush1.bf16.msra.mxu1 %v1903_v32  ;;  %v1945_v63 = vld [vmem:[#allocation5 + $0x218] ss:$24 sps:$4 sm:$0xff]   ;;  %v1952_v5 = vld [vmem:[#allocation5 + $0x27c] ss:$24 sps:$4 sm:$0xff]   ;;  %v1958_v10 = vld [vmem:[#allocation5 + $0x2ac] ss:$24 sps:$4 sm:$0xff]  }
  0xd2   : > { %956 = vmatprep.subr.bf16.mxu0 %v1851_v14  ;;  %1007 = vmatprep.subr.bf16.mxu1 %v1904_v33  ;;  %v1908_v6 = vld [vmem:[#allocation5 + $0x74] ss:$24 sps:$4 sm:$0xff]   ;;  %v1957_v7 = vld [vmem:[#allocation5 + $0x278] ss:$24 sps:$4 sm:$0xff]   ;;  %v1914_v11 = vld [vmem:[#allocation5 + $0xa4] ss:$24 sps:$4 sm:$0xff]  }
  0xd3   : > { %v1906_v9 = vld [vmem:[#allocation5 + $0x70] ss:$24 sps:$4 sm:$0xff]   ;;  %v1912_v13 = vld [vmem:[#allocation5 + $0xa0] ss:$24 sps:$4 sm:$0xff]   ;;  %v1966_v14 = vld [vmem:[#allocation5 + $0x2dc] ss:$24 sps:$4 sm:$0xff]  }
  0xd4   : > { %v1963_v12 = vld [vmem:[#allocation5 + $0x2a8] ss:$24 sps:$4 sm:$0xff]   ;;  %v1920_v15 = vld [vmem:[#allocation5 + $0xd4] ss:$24 sps:$4 sm:$0xff]   ;;  %v1971_v16 = vld [vmem:[#allocation5 + $0x2d8] ss:$24 sps:$4 sm:$0xff]  }
  0xd5   : > { %957 = vmatpush1.bf16.msra.mxu0 %v1853_v17  ;;  %1008 = vmatpush1.bf16.msra.mxu1 %v1909_v36  ;;  %v1918_v17 = vld [vmem:[#allocation5 + $0xd0] ss:$24 sps:$4 sm:$0xff]   ;;  %v1924_v19 = vld [vmem:[#allocation5 + $0x100] ss:$24 sps:$4 sm:$0xff]   ;;  %v1950_v28 = vld [vmem:[#allocation5 + $0x1c4] ss:$24 sps:$4 sm:$0xff]  }
  0xd6   : > { %958 = vmatprep.subr.bf16.mxu0 %v1854_v18  ;;  %1009 = vmatprep.subr.bf16.mxu1 %v1910_v37  ;;  %v1926_v18 = vld [vmem:[#allocation5 + $0x104] ss:$24 sps:$4 sm:$0xff]   ;;  %v1930_v23 = vld [vmem:[#allocation5 + $0x130] ss:$24 sps:$4 sm:$0xff]   ;;  %v1936_v25 = vld [vmem:[#allocation5 + $0x160] ss:$24 sps:$4 sm:$0xff]  }
  0xd7   : > { %v1948_v29 = vld [vmem:[#allocation5 + $0x1c0] ss:$24 sps:$4 sm:$0xff]   ;;  %v1962_v32 = vld [vmem:[#allocation5 + $0x224] ss:$24 sps:$4 sm:$0xff]   ;;  %s2656_s16 = scalar_lea.vmem [#allocation13], %s1556_s13  ;;  %s1683_s14 = sshll.u32 %s2310_s27, 10 }
  0xd8   : > { %v1960_v33 = vld [vmem:[#allocation5 + $0x220] ss:$24 sps:$4 sm:$0xff]   ;;  %v1974_v36 = vld [vmem:[#allocation5 + $0x284] ss:$24 sps:$4 sm:$0xff]   ;;  %s1417_s25 = sshll.u32 %s2656_s16, 4  ;;  %s2675_s9 = scalar_lea.hbm %s2728_s6, %s1683_s14  ;;  %s2668_s25 = int_to_ptr.vmem [resolvable:$true] %s1417_s25 }
  0xd9   : > { %959 = vmatpush1.bf16.msra.mxu0 %v1856_v20  ;;  %1010 = vmatpush1.bf16.msra.mxu1 %v1915_v40  ;;  %v1932_v20 = vld [vmem:[#allocation5 + $0x134] ss:$24 sps:$4 sm:$0xff]   ;;  %v1972_v37 = vld [vmem:[#allocation5 + $0x280] ss:$24 sps:$4 sm:$0xff]   ;;  %v1980_v40 = vld [vmem:[#allocation5 + $0x2e4] ss:$24 sps:$4 sm:$0xff]  }
  0xda   : > { %960 = vmatprep.subr.bf16.mxu0 %v1857_v26  ;;  %1011 = vmatprep.subr.bf16.mxu1 %v1916_v41  ;;  %v1944_v26 = vld [vmem:[#allocation5 + $0x194] ss:$24 sps:$4 sm:$0xff]   ;;  %v1978_v41 = vld [vmem:[#allocation5 + $0x2e0] ss:$24 sps:$4 sm:$0xff]   ;;  %s1404_s7 = scalar_lea.sflag [#allocation4], %s2522_s29  ;;  %s2155_s27 = scalar_lea.vmem %s2668_s25, 1024 }
  0xdb   : > { %p2156_p2 = scmp.ne.s32.totalorder %s2668_s25, %s2155_s27  ;;  %p2753_p7 = scmp.ne.s32.totalorder %s2741_s8, 0 }
  0xdc   : > { %s2252_s26 = smov [#allocation13]  }
  0xdd   : > { %961 = vmatpush1.bf16.msra.mxu0 %v1859_v27  ;;  %1012 = vmatpush1.bf16.msra.mxu1 %v1921_v44  ;;  %v1942_v27 = vld [vmem:[#allocation5 + $0x190] ss:$24 sps:$4 sm:$0xff]   ;;  %p2157_p10 = pnand %p2156_p2, %p2753_p7  ;;  %s2159_s10 = sshll.u32 %s2252_s26, 4  ;;  %s2160_s10 = int_to_ptr.vmem [resolvable:$false] %s2159_s10 }
  0xde   : > { %962 = vmatprep.subr.bf16.mxu0 %v1860_v30  ;;  %1013 = vmatprep.subr.bf16.mxu1 %v1922_v45  ;;  %v1956_v30 = vld [vmem:[#allocation5 + $0x1f4] ss:$24 sps:$4 sm:$0xff]   ;;  %s2161_s11 = scalar_lea.vmem %s2160_s10, 2048  ;;  %p2162_p11 = scmp.lt.s32.totalorder %s2668_s25, %s2160_s10 }
  0xdf   : > { %p2158_p1 = pneg %p2157_p10  ;;  %p2163_p12 = scmp.lt.s32.totalorder %s2161_s11, %s2155_s27 }
  0xe1   : > { %963 = vmatpush1.bf16.msra.mxu0 %v1862_v31  ;;  %1014 = vmatpush1.bf16.msra.mxu1 %v1927_v48  ;;  %v1954_v31 = vld [vmem:[#allocation5 + $0x1f0] ss:$24 sps:$4 sm:$0xff]   ;;  %p2164_p13 = por %p2163_p12, %p2162_p11 }
  0xe2   : > { %964 = vmatprep.subr.bf16.mxu0 %v1863_v34  ;;  %1015 = vmatprep.subr.bf16.mxu1 %v1928_v49  ;;  %v1970_v34 = vld [vmem:[#allocation5 + $0x254] ss:$24 sps:$4 sm:$0xff]  }
  0xe3   : > { %p2165_p8 = pnand %p2164_p13, %p2158_p1 }
  0xe5   : > { %965 = vmatpush1.bf16.msra.mxu0 %v1865_v35  ;;  %1016 = vmatpush1.bf16.msra.mxu1 %v1933_v52  ;;  %v1968_v35 = vld [vmem:[#allocation5 + $0x250] ss:$24 sps:$4 sm:$0xff]  }
  0xe6   : > { %966 = vmatprep.subr.bf16.mxu0 %v1866_v38  ;;  %1017 = vmatprep.subr.bf16.mxu1 %v1934_v53  ;;  %v1977_v38 = vld [vmem:[#allocation5 + $0x2b4] ss:$24 sps:$4 sm:$0xff]  }
  0xe9   : > { %967 = vmatpush1.bf16.msra.mxu0 %v1868_v39  ;;  %1018 = vmatpush1.bf16.msra.mxu1 %v1939_v56  ;;  %v1975_v39 = vld [vmem:[#allocation5 + $0x2b0] ss:$24 sps:$4 sm:$0xff]  }
  0xea   : > { %968 = vmatprep.subr.bf16.mxu0 %v1869_v42  ;;  %1019 = vmatprep.subr.bf16.mxu1 %v1940_v57  ;;  %v2249_v42 = vmov 0  }
  0xed   : > { %969 = vmatpush1.bf16.msra.mxu0 %v1871_v43  ;;  %1020 = vmatpush1.bf16.msra.mxu1 %v1945_v63 }
  0xee   : > { %970 = vmatprep.subr.bf16.mxu0 %v1872_v46  ;;  %1021 = vmatprep.subr.bf16.mxu1 %v1946_v1 }
  0xf1   : > { %971 = vmatpush1.bf16.msra.mxu0 %v1876_v47  ;;  %1022 = vmatpush1.bf16.msra.mxu1 %v1951_v2 }
  0xf2   : > { %972 = vmatprep.subr.bf16.mxu0 %v1878_v50  ;;  %1023 = vmatprep.subr.bf16.mxu1 %v1952_v5 }
  0xf5   : > { %973 = vmatpush1.bf16.msra.mxu0 %v1882_v51  ;;  %1024 = vmatpush1.bf16.msra.mxu1 %v1957_v7 }
  0xf6   : > { %974 = vmatprep.subr.bf16.mxu0 %v1884_v54  ;;  %1025 = vmatprep.subr.bf16.mxu1 %v1958_v10 }
  0xf9   : > { %975 = vmatpush1.bf16.msra.mxu0 %v1888_v55  ;;  %1026 = vmatpush1.bf16.msra.mxu1 %v1963_v12 }
  0xfa   : > { %1050 = vmatprep.subr.bf16.mxu0 %v1896_v58  ;;  %1027 = vmatprep.subr.bf16.mxu1 %v1966_v14 }
  0xfc   : > { %977 = vmatmul.mubr.bf16.vlgmr.msra.gmra.mrb[0].mxu0 %v2564_v61 }
  0xfd   : > { %1051 = vmatpush1.bf16.msra.mxu0 %v1894_v62  ;;  %986 = vmatprep.mubr.bf16.mxu0 %v2568_v3 }
  0xfe   : > { %1052 = vmatprep.subr.bf16.mxu0 %v1902_v0  ;;  %1028 = vmatpush1.bf16.msra.mxu1 %v1971_v16 }
 0x101   : > { %1053 = vmatpush1.bf16.msra.mxu0 %v1900_v4  ;;  %1030 = vmatmul.mubr.bf16.vlgmr.msra.gmra.mrb[0].mxu1 %v2564_v61 }
 0x102   : > { %1054 = vmatprep.subr.bf16.mxu0 %v1908_v6  ;;  %1039 = vmatprep.mubr.bf16.mxu1 %v2568_v3 }
 0x104   : > { %987 = vmatmul.mubr.bf16.gmra.mrb[4].mxu0 %v2574_v8 }
 0x105   : > { %1055 = vmatpush1.bf16.msra.mxu0 %v1906_v9  ;;  %1082 = vmatprep.mubr.bf16.mxu0 %v2552_v24  ;;  %v1938_v24 = vld [vmem:[#allocation5 + $0x164] ss:$24 sps:$4 sm:$0xff]  }
 0x106   : > { %1056 = vmatprep.subr.bf16.mxu0 %v1914_v11 }
 0x109   : > { %1057 = vmatpush1.bf16.msra.mxu0 %v1912_v13  ;;  %1040 = vmatmul.mubr.bf16.gmra.mrb[4].mxu1 %v2574_v8 }
 0x10a   : > { %1058 = vmatprep.subr.bf16.mxu0 %v1920_v15  ;;  %1176 = vmatprep.mubr.bf16.mxu1 %v2249_v42 }
 0x10d   : > { %1059 = vmatpush1.bf16.msra.mxu0 %v1918_v17  ;;  %v1981_v17 = vld [vmem:[#allocation7] sm:$0xff]  }
 0x10e   : > { %1060 = vmatprep.subr.bf16.mxu0 %v1926_v18  ;;  %v1982_v18 = vld [vmem:[#allocation7 + $0x8] sm:$0xff]  }
 0x111   : > { %1061 = vmatpush1.bf16.msra.mxu0 %v1924_v19  ;;  %v1119_v19 = vld [vmem:[#allocation8] sm:$0xff] }
 0x112   : > { %1062 = vmatprep.subr.bf16.mxu0 %v1932_v20  ;;  %v1120_v20 = vld [vmem:[#allocation8 + $0x8] sm:$0xff] }
 0x115   : > { %1063 = vmatpush1.bf16.msra.mxu0 %v1930_v23 }
 0x116   : > { %1064 = vmatprep.subr.bf16.mxu0 %v1938_v24  ;;  %v1121_v24 = vld [vmem:[#allocation8 + $0x10] sm:$0xff] }
 0x119   : > { %1065 = vmatpush1.bf16.msra.mxu0 %v1936_v25 }
 0x11a   : > { %1066 = vmatprep.subr.bf16.mxu0 %v1944_v26 }
 0x11d   : > { %1067 = vmatpush1.bf16.msra.mxu0 %v1942_v27  ;;  %v1122_v27 = vld [vmem:[#allocation8 + $0x18] sm:$0xff] }
 0x11e   : > { %1068 = vmatprep.subr.bf16.mxu0 %v1950_v28 }
 0x121   : > { %1069 = vmatpush1.bf16.msra.mxu0 %v1948_v29 }
 0x122   : > { %1070 = vmatprep.subr.bf16.mxu0 %v1956_v30 }
 0x125   : > { %1071 = vmatpush1.bf16.msra.mxu0 %v1954_v31 }
 0x126   : > { %1072 = vmatprep.subr.bf16.mxu0 %v1962_v32 }
 0x129   : > { %1073 = vmatpush1.bf16.msra.mxu0 %v1960_v33 }
 0x12a   : > { %1074 = vmatprep.subr.bf16.mxu0 %v1970_v34 }
 0x12d   : > { %1075 = vmatpush1.bf16.msra.mxu0 %v1968_v35 }
 0x12e   : > { %1076 = vmatprep.subr.bf16.mxu0 %v1974_v36 }
 0x131   : > { %1077 = vmatpush1.bf16.msra.mxu0 %v1972_v37  ;;  %v1123_v37 = vld [vmem:[#allocation8 + $0x20] sm:$0xff] }
 0x132   : > { %1078 = vmatprep.subr.bf16.mxu0 %v1977_v38 }
 0x135   : > { %1079 = vmatpush1.bf16.msra.mxu0 %v1975_v39  ;;  %v1124_v39 = vld [vmem:[#allocation8 + $0x28] sm:$0xff] }
 0x136   : > { %1080 = vmatprep.subr.bf16.mxu0 %v1980_v40 }
 0x139   : > { %1081 = vmatpush1.bf16.msra.mxu0 %v1978_v41 }
 0x13c   : > { %1083 = vmatmul.mubr.bf16.vlgmr.msra.gmra.mrb[8].mxu0 %v2564_v61 }
 0x13d   : > { %1092 = vmatprep.mubr.bf16.mxu0 %v2568_v3 }
 0x144   : > { %1093 = vmatmul.mubr.bf16.gmra.mrb[12].mxu0 %v2574_v8 }
 0x1cf   : > { %v978_v43 = vpop.f32.mrb[0].mxu0 }
 0x1d0   : > { %v980_v44 = vpop.f32.mrb[1].mxu0 }
 0x1d1   : > { %v982_v45 = vpop.f32.mrb[2].mxu0 }
 0x1d2   : > { %v1103_v46 = vpack.c.bf16 %v982_v45, %v978_v43  ;;  %v984_v47 = vpop.f32.mrb[3].mxu0  ;;  %v1125_v43 = vld [vmem:[#allocation8 + $0x30] sm:$0xff] }
 0x1d3   : > { %v1104_v48 = vpack.c.bf16 %v984_v47, %v980_v44 }
 0x1d4   : > { %v1031_v55 = vpop.f32.mrb[0].mxu1 }
 0x1d5   : > { %1144 = vmatprep.subr.bf16.mxu1 %v1104_v48  ;;  %v1033_v56 = vpop.f32.mrb[1].mxu1  ;;  %v1126_v48 = vld [vmem:[#allocation8 + $0x38] sm:$0xff] }
 0x1d6   : > { %1145 = vmatpush1.bf16.msra.mxu1 %v1103_v46  ;;  %v1035_v57 = vpop.f32.mrb[2].mxu1 }
 0x1d7   : > { %v988_v49 = vpop.f32.mrb[4].mxu0  ;;  %v1107_v58 = vpack.c.bf16 %v1035_v57, %v1031_v55  ;;  %v1037_v61 = vpop.f32.mrb[3].mxu1 }
 0x1d8   : > { %v990_v50 = vpop.f32.mrb[5].mxu0  ;;  %v1108_v62 = vpack.c.bf16 %v1037_v61, %v1033_v56 }
 0x1d9   : > { %v992_v51 = vpop.f32.mrb[6].mxu0 }
 0x1da   : > { %v1105_v52 = vpack.c.bf16 %v992_v51, %v988_v49  ;;  %v994_v53 = vpop.f32.mrb[7].mxu0 }
 0x1db   : > { %v1106_v54 = vpack.c.bf16 %v994_v53, %v990_v50 }
 0x1dc   : > { %v1041_v63 = vpop.f32.mrb[4].mxu1 }
 0x1dd   : > { %1146 = vmatprep.subr.bf16.mxu1 %v1106_v54  ;;  %v1043_v0 = vpop.f32.mrb[5].mxu1 }
 0x1de   : > { %1147 = vmatpush1.bf16.msra.mxu1 %v1105_v52  ;;  %v1045_v1 = vpop.f32.mrb[6].mxu1 }
 0x1df   : > { %1148 = vmatprep.subr.bf16.mxu1 %v1108_v62  ;;  %v1109_v2 = vpack.c.bf16 %v1045_v1, %v1041_v63  ;;  %v1047_v3 = vpop.f32.mrb[7].mxu1 }
 0x1e0   : > { %v1110_v4 = vpack.c.bf16 %v1047_v3, %v1043_v0  ;;  %v1205_v0 = vlaneseq }
 0x1e2   : > { %1149 = vmatpush1.bf16.msra.mxu1 %v1107_v58 }
 0x1e3   : > { %1150 = vmatprep.subr.bf16.mxu1 %v1110_v4 }
 0x1e6   : > { %1151 = vmatpush1.bf16.msra.mxu1 %v1109_v2  ;;  %v2599_v2 = vand.u32 127, %v1205_v0  ;;  %v1296_v0 = vld [vmem:[#allocation11 + $0x10] sm:$0xff] }
 0x1e8   : > { %vm1228_vm1 = vcmp.lt.s32.totalorder %v2599_v2, 16  ;;  %vm1208_vm2 = vcmp.ge.s32.totalorder %v2599_v2, 16  ;;  %vm1261_vm4 = vcmp.lt.s32.totalorder %v2599_v2, 112 }
 0x1e9   : > { %vm2611_vm3 = vmpackc.low %vm1208_vm2, %vm1208_vm2 }
 0x20f   : > { %v1084_v5 = vpop.f32.mrb[8].mxu0 }
 0x210   : > { %v1086_v6 = vpop.f32.mrb[9].mxu0 }
 0x211   : > { %v1088_v7 = vpop.f32.mrb[10].mxu0 }
 0x212   : > { %v1111_v8 = vpack.c.bf16 %v1088_v7, %v1084_v5  ;;  %v1090_v9 = vpop.f32.mrb[11].mxu0 }
 0x213   : > { %v1112_v10 = vpack.c.bf16 %v1090_v9, %v1086_v6 }
 0x215   : > { %1152 = vmatprep.subr.bf16.mxu1 %v1112_v10 }
 0x216   : > { %1153 = vmatpush1.bf16.msra.mxu1 %v1111_v8 }
 0x217   : > { %v1094_v11 = vpop.f32.mrb[12].mxu0 }
 0x218   : > { %v1096_v12 = vpop.f32.mrb[13].mxu0 }
 0x219   : > { %v1098_v13 = vpop.f32.mrb[14].mxu0 }
 0x21a   : > { %v1113_v14 = vpack.c.bf16 %v1098_v13, %v1094_v11  ;;  %v1100_v15 = vpop.f32.mrb[15].mxu0 }
 0x21b   : > { %v1114_v16 = vpack.c.bf16 %v1100_v15, %v1096_v12  ;;  %v1298_v15 = vld [vmem:[#allocation11 + $0x20] sm:$0xff] }
 0x21d   : > { %1154 = vmatprep.subr.bf16.mxu1 %v1114_v16 }
 0x21e   : > { %1155 = vmatpush1.bf16.msra.mxu1 %v1113_v14 }
 0x221   : > { %1659 = vmatmul.mubr.msk.bf16.vlgmr.msra.gmra.mrb[8].mxu1 %vm1137_vm0, %v1981_v17 }
 0x222   : > { %1186 = vmatprep.mubr.bf16.mxu1 %v2249_v42 }
 0x229   : > { %1660 = vmatmul.mubr.msk.bf16.gmra.mrb[12].mxu1 %vm1137_vm0, %v1982_v18 }
 0x22a   : > { %1350 = vmatprep.mubr.bf16.mxu1 %v2249_v42 }
 0x2f4   : > { %v1178_v23 = vpop.f32.mrb[8].mxu1 }
 0x2f5   : > { %v1179_v25 = vadd.f32 %v1178_v23, %v1119_v19  ;;  %v1180_v26 = vpop.f32.mrb[9].mxu1 }
 0x2f6   : > { %v1181_v28 = vadd.f32 %v1180_v26, %v1120_v20  ;;  %v1182_v29 = vpop.f32.mrb[10].mxu1 }
 0x2f7   : > { %v1183_v30 = vadd.f32 %v1182_v29, %v1121_v24  ;;  %v1184_v31 = vpop.f32.mrb[11].mxu1  ;;  %v1197_v33 = vmax.f32 %v1179_v25, 0.0 }
 0x2f8   : > { %v1185_v32 = vadd.f32 %v1184_v31, %v1122_v27  ;;  %v1198_v35 = vmax.f32 %v1181_v28, 0.0  ;;  %v1207_v31 = vadd.s32 128, %v2599_v2 }
 0x2f9   : > { %v1199_v34 = vmax.f32 %v1183_v30, 0.0 }
 0x2fa   : > { %v1200_v36 = vmax.f32 %v1185_v32, 0.0  ;;  %vm1211_vm5 = vcmp.lt.s32.totalorder %v1207_v31, 240 }
 0x2fb   : > { %v2589_v38 = vpack.c.bf16 %v1199_v34, %v1197_v33  ;;  %v1793_v40 = vpack.i.bf16 %v1199_v34, %v1197_v33  ;;  %vm1669_vm6 = vmpackc.low %vm1211_vm5, %vm1211_vm5 }
 0x2fc   : > { %v1188_v41 = vpop.f32.mrb[12].mxu1  ;;  %v1798_v44 = vpack.i.bf16 %v1200_v36, %v1198_v35  ;;  %v2591_v45 = vpack.c.bf16 %v1200_v36, %v1198_v35 }
 0x2fd   : > { %v1189_v46 = vadd.f32 %v1188_v41, %v1123_v37  ;;  %v1190_v47 = vpop.f32.mrb[13].mxu1  ;;  %1794 = vrot.lane.b32.xlu0 %v1793_v40, %s2250_s28 }
 0x2fe   : > { %v1191_v49 = vadd.f32 %v1190_v47, %v1124_v39  ;;  %v1192_v50 = vpop.f32.mrb[14].mxu1 }
 0x2ff   : > { %v1193_v51 = vadd.f32 %v1192_v50, %v1125_v43  ;;  %v1194_v52 = vpop.f32.mrb[15].mxu1  ;;  %v1201_v54 = vmax.f32 %v1189_v46, 0.0 }
 0x300   : > { %v1195_v53 = vadd.f32 %v1194_v52, %v1126_v48  ;;  %v1202_v56 = vmax.f32 %v1191_v49, 0.0 }
 0x301   : > { %v1203_v55 = vmax.f32 %v1193_v51, 0.0  ;;  %1799 = vrot.lane.b32.xlu0 %v1798_v44, %s2250_s28 }
 0x302   : > { %v1204_v57 = vmax.f32 %v1195_v53, 0.0 }
 0x303   : > { %v2595_v58 = vpack.c.bf16 %v1203_v55, %v1201_v54  ;;  %v1803_v61 = vpack.i.bf16 %v1203_v55, %v1201_v54  ;;  %v1983_v55 = vld [vmem:[#allocation10] sm:$0xff]  }
 0x304   : > { %v1808_v62 = vpack.i.bf16 %v1204_v57, %v1202_v56  ;;  %v1285_v63 = vpack.c.bf16 %v1204_v57, %v1202_v56  ;;  %v1984_v56 = vld [vmem:[#allocation10 + $0x8] sm:$0xff]   ;;  %v1294_v57 = vld [vmem:[#allocation11] sm:$0xff] }
 0x305   : > { %1804 = vrot.lane.b32.xlu1 %v1803_v61, %s2250_s28  ;;  %1814 = vrot.lane.b32.xlu0 %v1793_v40, %s2251_s17 }
 0x309   : > { %1809 = vrot.lane.b32.xlu1 %v1808_v62, %s2250_s28  ;;  %1824 = vrot.lane.b32.xlu0 %v1803_v61, %s2251_s17  ;;  %v1295_v61 = vld [vmem:[#allocation11 + $0x8] sm:$0xff] }
 0x30d   : > { %1819 = vrot.lane.b32.xlu1 %v1798_v44, %s2251_s17 }
 0x311   : > { %1829 = vrot.lane.b32.xlu1 %v1808_v62, %s2251_s17 }
 0x36f   : > { %v1795_v1 = vpop.permute.xlu0 %1794 }
 0x370   : > { %v1797_v4 = vunpack.i.h.bf16 %v1795_v1  ;;  %v1796_v5 = vunpack.i.l.bf16 %v1795_v1 }
 0x373   : > { %v1800_v3 = vpop.permute.xlu0 %1799 }
 0x374   : > { %v1802_v6 = vunpack.i.h.bf16 %v1800_v3  ;;  %v1801_v7 = vunpack.i.l.bf16 %v1800_v3  ;;  %v1373_v3 = vunpack.c.l.bf16 %v2548_v22 }
 0x376   : > { %v1233_v8 = vsel %vm1228_vm1, %v1801_v7, %v1796_v5  ;;  %v1234_v9 = vsel %vm1228_vm1, %v1802_v6, %v1797_v4  ;;  %v1229_v10 = vsel %vm1228_vm1, %v1796_v5, %v1801_v7  ;;  %v1230_v11 = vsel %vm1228_vm1, %v1797_v4, %v1802_v6  ;;  %v1297_v4 = vld [vmem:[#allocation11 + $0x18] sm:$0xff] }
 0x377   : > { %v1664_v12 = vpack.c.bf16 %v1234_v9, %v1233_v8  ;;  %v1805_v13 = vpop.permute.xlu1 %1804  ;;  %v1279_v14 = vpack.c.bf16 %v1230_v11, %v1229_v10  ;;  %v1815_v27 = vpop.permute.xlu0 %1814 }
 0x378   : > { %v1807_v17 = vunpack.i.h.bf16 %v1805_v13  ;;  %v1806_v18 = vunpack.i.l.bf16 %v1805_v13  ;;  %v1817_v35 = vunpack.i.h.bf16 %v1815_v27  ;;  %v1816_v36 = vunpack.i.l.bf16 %v1815_v27  ;;  %v1301_v27 = vld [vmem:[#allocation11 + $0x38] sm:$0xff] }
 0x379   : > { %1318 = vmatprep.subr.bf16.mxu1 %v1279_v14 }
 0x37a   : > { %1665 = vmatpush1.bf16.msk.msra.mxu1 %vm2611_vm3, %v1664_v12 }
 0x37b   : > { %v1810_v16 = vpop.permute.xlu1 %1809  ;;  %v1825_v37 = vpop.permute.xlu0 %1824 }
 0x37c   : > { %v1812_v19 = vunpack.i.h.bf16 %v1810_v16  ;;  %v1811_v20 = vunpack.i.l.bf16 %v1810_v16  ;;  %v1827_v44 = vunpack.i.h.bf16 %v1825_v37  ;;  %v1826_v46 = vunpack.i.l.bf16 %v1825_v37 }
 0x37e   : > { %v1235_v23 = vsel %vm1228_vm1, %v1811_v20, %v1806_v18  ;;  %v1236_v24 = vsel %vm1228_vm1, %v1812_v19, %v1807_v17  ;;  %v1231_v25 = vsel %vm1228_vm1, %v1806_v18, %v1811_v20  ;;  %v1232_v26 = vsel %vm1228_vm1, %v1807_v17, %v1812_v19  ;;  %v1299_v17 = vld [vmem:[#allocation11 + $0x28] sm:$0xff] }
 0x37f   : > { %v1667_v28 = vpack.c.bf16 %v1236_v24, %v1235_v23  ;;  %v1820_v29 = vpop.permute.xlu1 %1819  ;;  %v1281_v30 = vpack.c.bf16 %v1232_v26, %v1231_v25  ;;  %v1376_v20 = vunpack.c.h.bf16 %v2557_v59  ;;  %v1300_v23 = vld [vmem:[#allocation11 + $0x30] sm:$0xff]  ;;  %v1377_v26 = vunpack.c.l.bf16 %v2560_v60 }
 0x380   : > { %v1822_v32 = vunpack.i.h.bf16 %v1820_v29  ;;  %v1821_v33 = vunpack.i.l.bf16 %v1820_v29 }
 0x381   : > { %1320 = vmatprep.subr.bf16.mxu1 %v1281_v30  ;;  %v1378_v30 = vunpack.c.h.bf16 %v2560_v60 }
 0x382   : > { %1668 = vmatpush1.bf16.msk.msra.mxu1 %vm2611_vm3, %v1667_v28  ;;  %v1266_v39 = vsel %vm1261_vm4, %v1821_v33, %v1816_v36  ;;  %v1267_v40 = vsel %vm1261_vm4, %v1822_v32, %v1817_v35  ;;  %v1263_v47 = vsel %vm1261_vm4, %v1817_v35, %v1822_v32 }
 0x383   : > { %v1830_v34 = vpop.permute.xlu1 %1829  ;;  %1322 = vmatprep.subr.bf16.mxu1 %v2591_v45  ;;  %v1262_v45 = vsel %vm1261_vm4, %v1816_v36, %v1821_v33  ;;  %v1670_v48 = vpack.c.bf16 %v1267_v40, %v1266_v39 }
 0x384   : > { %v1832_v41 = vunpack.i.h.bf16 %v1830_v34  ;;  %v1831_v43 = vunpack.i.l.bf16 %v1830_v34 }
 0x386   : > { %1323 = vmatpush1.bf16.msra.mxu1 %v2589_v38  ;;  %v1268_v49 = vsel %vm1261_vm4, %v1831_v43, %v1826_v46  ;;  %v1269_v50 = vsel %vm1261_vm4, %v1832_v41, %v1827_v44  ;;  %v1286_v38 = vpack.c.bf16 %v1263_v47, %v1262_v45  ;;  %v1264_v51 = vsel %vm1261_vm4, %v1826_v46, %v1831_v43 }
 0x387   : > { %1324 = vmatprep.subr.bf16.mxu1 %v1285_v63  ;;  %v1265_v52 = vsel %vm1261_vm4, %v1827_v44, %v1832_v41  ;;  %v1673_v53 = vpack.c.bf16 %v1269_v50, %v1268_v49  ;;  %v1372_v63 = vunpack.c.h.bf16 %v2545_v21 }
 0x388   : > { %v1288_v54 = vpack.c.bf16 %v1265_v52, %v1264_v51 }
 0x38a   : > { %1325 = vmatpush1.bf16.msra.mxu1 %v2595_v58  ;;  %v1371_v58 = vunpack.c.l.bf16 %v2545_v21 }
 0x38b   : > { %1671 = vmatprep.subr.msk.bf16.mxu1 %vm1669_vm6, %v1670_v48 }
 0x38e   : > { %1327 = vmatpush1.bf16.msra.mxu1 %v1286_v38 }
 0x38f   : > { %1674 = vmatprep.subr.msk.bf16.mxu1 %vm1669_vm6, %v1673_v53 }
 0x392   : > { %1329 = vmatpush1.bf16.msra.mxu1 %v1288_v54 }
 0x395   : > { %1675 = vmatmul.mubr.msk.bf16.vlgmr.msra.gmra.mrb[16].mxu1 %vm1137_vm0, %v1983_v55 }
 0x396   : > { %1360 = vmatprep.mubr.bf16.mxu1 %v2249_v42  ;;  %v1374_v42 = vunpack.c.h.bf16 %v2548_v22  ;;  %v1375_v22 = vunpack.c.l.bf16 %v2557_v59 }
 0x39d   : > { %1676 = vmatmul.mubr.msk.bf16.gmra.mrb[20].mxu1 %vm1137_vm0, %v1984_v56 }
 0x468   : > { %v1352_v62 = vpop.f32.mrb[16].mxu1 }
 0x469   : > { %v1353_v1 = vadd.f32 %v1352_v62, %v1294_v57  ;;  %v1354_v2 = vpop.f32.mrb[17].mxu1 }
 0x46a   : > { %v1355_v5 = vadd.f32 %v1354_v2, %v1295_v61  ;;  %v1356_v6 = vpop.f32.mrb[18].mxu1 }
 0x46b   : > { %v1379_v7 = vadd.f32 %v1371_v58, %v1353_v1  ;;  %v1357_v8 = vadd.f32 %v1356_v6, %v1296_v0  ;;  %v1358_v9 = vpop.f32.mrb[19].mxu1 }
 0x46c   : > { %v1380_v10 = vadd.f32 %v1372_v63, %v1355_v5  ;;  %v1359_v11 = vadd.f32 %v1358_v9, %v1297_v4 }
 0x46d   : > { %v1387_v12 = vmax.f32 %v1379_v7, 0.0  ;;  %v1381_v13 = vadd.f32 %v1373_v3, %v1357_v8 }
 0x46e   : > { %v1388_v14 = vmax.f32 %v1380_v10, 0.0  ;;  %v1382_v21 = vadd.f32 %v1374_v42, %v1359_v11 }
 0x46f   : > { %1395 = vst [vmem:[%s2656_s16] sm:$0xff] %v1387_v12  ;;  %v1389_v16 = vmax.f32 %v1381_v13, 0.0 }
 0x470   : > { %1396 = vst [vmem:[%s2656_s16 + $0x8] sm:$0xff] %v1388_v14  ;;  %v1390_v18 = vmax.f32 %v1382_v21, 0.0  ;;  %v1362_v19 = vpop.f32.mrb[20].mxu1 }
 0x471   : > { %1397 = vst [vmem:[%s2656_s16 + $0x10] sm:$0xff] %v1389_v16  ;;  %v1363_v24 = vadd.f32 %v1362_v19, %v1298_v15  ;;  %v1364_v25 = vpop.f32.mrb[21].mxu1 }
 0x472   : > { %1398 = vst [vmem:[%s2656_s16 + $0x18] sm:$0xff] %v1390_v18  ;;  %v1365_v28 = vadd.f32 %v1364_v25, %v1299_v17  ;;  %v1366_v29 = vpop.f32.mrb[22].mxu1 }
 0x473   : > { %v1383_v31 = vadd.f32 %v1375_v22, %v1363_v24  ;;  %v1367_v32 = vadd.f32 %v1366_v29, %v1300_v23  ;;  %v1368_v33 = vpop.f32.mrb[23].mxu1 }
 0x474   : > { %v1384_v59 = vadd.f32 %v1376_v20, %v1365_v28  ;;  %v1369_v34 = vadd.f32 %v1368_v33, %v1301_v27 }
 0x475   : > { %v1391_v35 = vmax.f32 %v1383_v31, 0.0  ;;  %v1385_v36 = vadd.f32 %v1377_v26, %v1367_v32 }
 0x476   : > { %v1392_v37 = vmax.f32 %v1384_v59, 0.0  ;;  %v1386_v39 = vadd.f32 %v1378_v30, %v1369_v34 }
 0x477   : > { %1399 = vst [vmem:[%s2656_s16 + $0x20] sm:$0xff] %v1391_v35  ;;  %v1393_v60 = vmax.f32 %v1385_v36, 0.0 }
 0x478   : > { %1400 = vst [vmem:[%s2656_s16 + $0x28] sm:$0xff] %v1392_v37  ;;  %v1394_v40 = vmax.f32 %v1386_v39, 0.0 }
 0x479   : > { %1401 = vst [vmem:[%s2656_s16 + $0x30] sm:$0xff] %v1393_v60 }
 0x47a   : > { %1402 = vst [vmem:[%s2656_s16 + $0x38] sm:$0xff] %v1394_v40 }
 0x47b   : > { %2168 = shalt.err (!%p2165_p8)
}
 0x47c   : > { %s2169_s18 = scalar_lea.hbm %s2675_s9, 1024  ;;  %s2173_s16 = scalar_lea.hbm %s2728_s6, 2048 }
 0x47d   : > { %p2170_p6 = scmp.ne.s32.totalorder %s2675_s9, %s2169_s18  ;;  %p2174_p3 = scmp.lt.u32.totalorder %s2675_s9, %s2728_s6 }
 0x47e   : > { %p2175_p0 = scmp.lt.u32.totalorder %s2173_s16, %s2169_s18  ;;  %p2177_p2 = scmp.lt.u32.totalorder %s2169_s18, %s2675_s9 }
 0x47f   : > { %p2171_p9 = pnand %p2170_p6, %p2753_p7 }
 0x480   : > { %p2176_p5 = por %p2175_p0, %p2174_p3 }
 0x481   : > { %p2172_p4 = pneg %p2171_p9 }
 0x482   : > { %p2178_p10 = por %p2177_p2, %p2176_p5 }
 0x484   : > { %p2179_p1 = pnand %p2178_p10, %p2172_p4 }
 0x486   : > { %2182 = shalt.err (!%p2179_p1)
}
 0x487   : > { %s2253_s30 = smov 256  }
 0x488   : > { %1706 = dma.vmem_to_hbm [thread:$0]  (%p2753_p7), %s2668_s25, 1024, %s2675_s9, %s1404_s7, %s2253_s30, %s2253_s30, %s2250_s28  }
 0x489 PF: > { %s1432_s27 = sand.u32 1, %s2221_s21   ;;  %p2754_p11 = scmp.ne.s32.totalorder %s2742_s20, 0 }
 0x48a   : > { %p2755_p12 = scmp.ge.s32.totalorder %s2233_s24, 2  ;;  %s1433_s26 = scalar_lea.sflag [#allocation4], %s1432_s27 }
 0x48c   : > { %p1729_p13 = pnand %p2755_p12, %p2754_p11 }
 0x48e   : > { %2216 = dma.done.wait (!%p1729_p13), %s1433_s26, 1024  }
 0x48f   : > { %2218 = vsyncadd (!%p1729_p13), %s1433_s26, 4294966272  ;;  %p22_p8 = scmp.ge.s32.totalorder %s2449_s15, 4   ;;  %s2756_s21 = smov %s2225_s22 }
 0x490   : > { %s2757_s22 = smov %s2229_s23  ;;  %s2758_s23 = smov %s2461_s19 }
 0x491   : > { %s2759_s24 = smov %s2449_s15  ;;  %24 = sbr.rel (!%p22_p8) target bundleno = 8 (0x8), region = 109 }
 0x498   :  { %1438 = vsyncpa [#allocation3], 1 }
 0x499   :  { %1440 = vsyncpa [#allocation3 + $0x1], 1 }
 0x49a   :  { %1441 = vsyncpa [#allocation6], 1 }
 0x49b   :  { %1442 = vsyncpa [#allocation9], 1 }
 0x49c   :  { %1443 = vsyncpa [#allocation12], 1 }
 0x49d   :  { %1444 = vsyncpa [#allocation4], 1 }
 0x49e   :  { %1446 = vsyncpa [#allocation4 + $0x1], 1 }

</bundles_post_ra>
